<compile_context>
chip_gen: v7x
topology: tpu7x:2x2x1
jax: 0.10.0
libtpu: 0.0.40
codegen_flags: <defaults>
</compile_context>

<pallas_src>
import functools

import jax
import jax.numpy as jnp
from jax.experimental import pallas as pl
from jax.experimental.pallas import tpu as pltpu


def _round_up(v, m):
    return ((v + m - 1) // m) * m


# ---------------------------------------------------------------------------
# Filter bank construction (deterministic "register_filters" equivalent).
# ---------------------------------------------------------------------------
def _morlet_2d(H, W, sigma, theta, xi):
    """Complex Morlet wavelet (zero-mean, DC-corrected) on a periodic grid."""
    yy, xx = jnp.meshgrid(jnp.arange(H), jnp.arange(W), indexing="ij")
    yy = ((yy + H // 2) % H - H // 2).astype(jnp.float32)
    xx = ((xx + W // 2) % W - W // 2).astype(jnp.float32)
    gauss = jnp.exp(-(xx**2 + yy**2) / (2.0 * sigma**2))
    arg = xi * (xx * jnp.cos(theta) + yy * jnp.sin(theta))
    wr = gauss * jnp.cos(arg)
    wi = gauss * jnp.sin(arg)
    # kymatio-style DC correction: subtract beta * gaussian so the band-pass
    # has zero mean (real and imaginary parts separately).
    g_sum = jnp.sum(gauss)
    wr = wr - (jnp.sum(wr) / g_sum) * gauss
    wi = wi - (jnp.sum(wi) / g_sum) * gauss
    return wr / g_sum, wi / g_sum


def _gaussian_2d(H, W, sigma):
    yy, xx = jnp.meshgrid(jnp.arange(H), jnp.arange(W), indexing="ij")
    yy = ((yy + H // 2) % H - H // 2).astype(jnp.float32)
    xx = ((xx + W // 2) % W - W // 2).astype(jnp.float32)
    g = jnp.exp(-(xx**2 + yy**2) / (2.0 * sigma**2))
    return g / jnp.sum(g)


def _circ_conv_matrix(h):
    """Dense circular-convolution matrix C with (C @ vec(x))[p] = (h (*) x)[p]."""
    H, W = h.shape
    py = jnp.arange(H)[:, None, None, None]
    px = jnp.arange(W)[None, :, None, None]
    qy = jnp.arange(H)[None, None, :, None]
    qx = jnp.arange(W)[None, None, None, :]
    mat = h[(py - qy) % H, (px - qx) % W]          # (H, W, H, W)
    return mat.reshape(H * W, H * W)


def build_filter_bank(H, W, J=1, L=4):
    """Returns (W1, PhiSub0, Phi2, PhiSubT), all bfloat16.

    W1      : (N, 2*Kb*N)       band-pass real halves in lanes [0:Kb*N],
                                imaginary halves in [Kb*N:2*Kb*N];  Y = X @ W1.
    PhiSub0 : (N, N0_pad)       low-pass + subsample, columns zero-padded to a
                                multiple of 128 lanes (lane-dense s0 store).
    Phi2    : (Kb*N, N1_pad)    block-diagonal low-pass + subsample for all Kb
                                moduli fused into one matmul / one store.
    PhiSubT : (N, N_out)        unpadded single-filter low-pass (reference only).
    """
    N = H * W
    H_out, W_out = H // (2**J), W // (2**J)
    N_out = H_out * W_out
    Kb = J * L

    wr_cols, wi_cols = [], []
    for j in range(J):
        for l in range(L):
            sigma = 0.8 * (2.0**j)
            xi = 3.0 * jnp.pi / 4.0 / (2.0**j)
            theta = (l * jnp.pi) / L
            hr, hi = _morlet_2d(H, W, sigma, theta, xi)
            wr_cols.append(_circ_conv_matrix(hr).T)   # (N, N)
            wi_cols.append(_circ_conv_matrix(hi).T)   # (N, N)
    W1 = jnp.concatenate(wr_cols + wi_cols, axis=1).astype(jnp.bfloat16)

    phi = _gaussian_2d(H, W, sigma=0.8 * (2.0**J))
    qy = jnp.arange(H)[None, None, :, None]
    qx = jnp.arange(W)[None, None, None, :]
    oy = (2**J) * jnp.arange(H_out)[:, None, None, None]
    ox = (2**J) * jnp.arange(W_out)[None, :, None, None]
    phi_sub = phi[(oy - qy) % H, (ox - qx) % W].reshape(N_out, N)   # (N_out, N)
    phi_sub_T = phi_sub.T                                            # (N, N_out) f32

    # Order-0 weight, output lanes padded to a multiple of 128 (unmasked store).
    N0_pad = _round_up(N_out, 128)
    PhiSub0 = jnp.zeros((N, N0_pad), jnp.float32)
    PhiSub0 = PhiSub0.at[:, :N_out].set(phi_sub_T).astype(jnp.bfloat16)

    # Order-1 second stage: block-diagonal so one matmul + one lane-dense store
    # handles all Kb filters at once.
    N1_pad = _round_up(Kb * N_out, 128)
    Phi2 = jnp.zeros((Kb * N, N1_pad), jnp.float32)
    for k in range(Kb):
        Phi2 = Phi2.at[k * N:(k + 1) * N, k * N_out:(k + 1) * N_out].set(phi_sub_T)
    Phi2 = Phi2.astype(jnp.bfloat16)

    PhiSubT = phi_sub_T.astype(jnp.bfloat16)
    return W1, PhiSub0, Phi2, PhiSubT


# ---------------------------------------------------------------------------
# Pallas kernel: one row-tile per grid step; weights VMEM-resident.
# ---------------------------------------------------------------------------
def _scattering_kernel(x_ref, w1_ref, phi0_ref, phi2_ref, s0_ref, s1_ref):
    x_bf = x_ref[...].astype(jnp.bfloat16)                    # (tm, N)

    # Order-0: low-pass + subsample.  One full-width (tm, N0_pad>=128) store.
    s0_ref[...] = jnp.dot(x_bf, phi0_ref[...],
                          preferred_element_type=jnp.float32)

    # Order-1: all Kb complex band-pass filters in one fused MXU matmul.
    kbn = w1_ref.shape[1] // 2                                # static Python int
    y = jnp.dot(x_bf, w1_ref[...],
                preferred_element_type=jnp.float32)           # (tm, 2*Kb*N)
    yr = y[:, :kbn]                                           # lane-aligned slice
    yi = y[:, kbn:]
    u = jnp.sqrt(yr * yr + yi * yi).astype(jnp.bfloat16)      # modulus, (tm, Kb*N)

    # Second stage: block-diagonal low-pass matmul -> one lane-dense store.
    s1_ref[...] = jnp.dot(u, phi2_ref[...],
                          preferred_element_type=jnp.float32)


@functools.partial(jax.jit, static_argnames=("J",))
def scattering_forward(x, W1, PhiSub0, Phi2, *, J=1):
    """x: (B, C, H, W)  ->  (B, C, 1 + J*L, H/2^J, W/2^J) float32."""
    B, C, H, W = x.shape
    N = H * W
    H_out, W_out = H // (2**J), W // (2**J)
    N_out = H_out * W_out
    Kb = W1.shape[1] // (2 * N)
    N0_pad = PhiSub0.shape[1]
    N1_pad = Phi2.shape[1]
    M = B * C

    # Row tile: 128 rows once the batch is large enough, otherwise the smallest
    # multiple of 8 covering M (sublane constraint).
    tm = 128 if M >= 128 else _round_up(M, 8)
    M_pad = _round_up(M, tm)

    # Accept whatever dtype the producer emits (bf16 input halves the HBM
    # stream; the kernel casts to bf16 on the MXU path either way).
    x_flat = x.reshape(M, N)
    if M_pad != M:
        x_flat = jnp.pad(x_flat, ((0, M_pad - M), (0, 0)))

    grid = (M_pad // tm,)

    flops = (2 * M_pad * N * (2 * Kb * N + N0_pad)
             + 2 * M_pad * (Kb * N) * N1_pad)
    bytes_accessed = (x_flat.size * x_flat.dtype.itemsize
                      + (W1.size + PhiSub0.size + Phi2.size) * 2
                      + M_pad * (N0_pad + N1_pad) * 4)

    # Explicit VMEM budget: resident weights + double-buffered x/output tiles
    # + f32 y/u intermediates, with headroom (capped at 64 MiB for v7x).
    vmem_bytes = ((W1.size + PhiSub0.size + Phi2.size) * 2
                  + 2 * tm * (N + N0_pad + N1_pad) * 4
                  + 2 * tm * (2 * Kb * N) * 4)
    vmem_limit = min(int(vmem_bytes * 3 // 2) + (8 << 20), 64 << 20)

    s0_pad, s1_pad = pl.pallas_call(
        _scattering_kernel,
        grid=grid,
        in_specs=[
            pl.BlockSpec((tm, N), lambda i: (i, 0)),            # x: pipelined
            pl.BlockSpec((N, 2 * Kb * N), lambda i: (0, 0)),    # W1: resident
            pl.BlockSpec((N, N0_pad), lambda i: (0, 0)),        # PhiSub0: resident
            pl.BlockSpec((Kb * N, N1_pad), lambda i: (0, 0)),   # Phi2: resident
        ],
        out_specs=(
            pl.BlockSpec((tm, N0_pad), lambda i: (i, 0)),
            pl.BlockSpec((tm, N1_pad), lambda i: (i, 0)),
        ),
        out_shape=(
            jax.ShapeDtypeStruct((M_pad, N0_pad), jnp.float32),  # order-0 (padded)
            jax.ShapeDtypeStruct((M_pad, N1_pad), jnp.float32),  # order-1 (lane-dense)
        ),
        compiler_params=pltpu.CompilerParams(
            dimension_semantics=("parallel",),      # v7x: split rows across 2 TCs
            vmem_limit_bytes=vmem_limit,
        ),
        cost_estimate=pl.CostEstimate(
            flops=flops,
            transcendentals=M_pad * Kb * N,
            bytes_accessed=bytes_accessed,
        ),
    )(x_flat, W1, PhiSub0, Phi2)

    # Wrapper-side layout plumbing (free): kymatio-style output arrangement.
    s0 = s0_pad[:M, :N_out].reshape(B, C, 1, H_out, W_out)
    s1 = s1_pad[:M, :Kb * N_out].reshape(B, C, Kb, H_out, W_out)
    return jnp.concatenate([s0, s1], axis=2)


def _reference(x, W1, PhiSubT, J):
    """Pure-JAX f32 reference using the same (bf16-quantized) filter bank."""
    B, C, H, W = x.shape
    N = H * W
    M = B * C
    N_out = PhiSubT.shape[1]
    Kb = W1.shape[1] // (2 * N)
    H_out, W_out = H // (2**J), W // (2**J)

    xf = x.reshape(M, N).astype(jnp.float32)
    W1f = W1.astype(jnp.float32)
    Pf = PhiSubT.astype(jnp.float32)

    y = xf @ W1f
    yr, yi = y[:, :Kb * N], y[:, Kb * N:]
    u = jnp.sqrt(yr * yr + yi * yi)
    s0 = (xf @ Pf).reshape(B, C, 1, H_out, W_out)
    s1 = jnp.stack([u[:, k * N:(k + 1) * N] @ Pf for k in range(Kb)], axis=1)
    s1 = s1.reshape(B, C, Kb, H_out, W_out)
    return jnp.concatenate([s0, s1], axis=2)


# TODO(synk): ScatteringTorch.forward's numpy->torch conversion and
# backend.input_checks are host-side glue with no Pallas equivalent.

if __name__ == "__main__":
    B, C, H, W = 2, 4, 16, 16
    J, L = 1, 4

    key = jax.random.PRNGKey(0)
    x = jax.random.normal(key, (B, C, H, W), dtype=jnp.float32)

    W1, PhiSub0, Phi2, PhiSubT = build_filter_bank(H, W, J=J, L=L)

    S = scattering_forward(x, W1, PhiSub0, Phi2, J=J)
    S = jax.block_until_ready(S)

    assert S.shape == (B, C, 1 + J * L, H // 2**J, W // 2**J), S.shape
    assert S.dtype == jnp.float32
    assert bool(jnp.all(jnp.isfinite(S)))

    # Numerical sanity check against a pure-JAX reference (kernel casts x and
    # the modulus to bf16 for the MXU, so allow a small relative tolerance).
    S_ref = _reference(x, W1, PhiSubT, J)
    rel_err = float(jnp.max(jnp.abs(S - S_ref)) /
                    (jnp.max(jnp.abs(S_ref)) + 1e-6))
    assert rel_err < 5e-2, rel_err

    print("KERNEL_OK")
</pallas_src>

<mosaic_0001>
module attributes {stable_mosaic.version = 11 : i64} {
  func.func @_scattering_kernel(%arg0: i32, %arg1: memref<8x256xf32, #tpu.memory_space<vmem>>, %arg2: memref<256x2048xbf16, #tpu.memory_space<vmem>>, %arg3: memref<256x128xbf16, #tpu.memory_space<vmem>>, %arg4: memref<1024x256xbf16, #tpu.memory_space<vmem>>, %arg5: memref<8x128xf32, #tpu.memory_space<vmem>>, %arg6: memref<8x256xf32, #tpu.memory_space<vmem>>) attributes {dimension_semantics = [#tpu.dimension_semantics<parallel>], iteration_bounds = array<i64: 1>, scalar_prefetch = 0 : i64, scratch_operands = 0 : i64, tpu.core_type = #tpu.core_type<tc>, window_params = [{transform_indices = @transform_0, window_bounds = array<i64: 8, 256>}, {pipeline_mode = #tpu.pipeline_mode<synchronous>, transform_indices = @transform_1, window_bounds = array<i64: 256, 2048>}, {pipeline_mode = #tpu.pipeline_mode<synchronous>, transform_indices = @transform_2, window_bounds = array<i64: 256, 128>}, {pipeline_mode = #tpu.pipeline_mode<synchronous>, transform_indices = @transform_3, window_bounds = array<i64: 1024, 256>}, {transform_indices = @transform_4, window_bounds = array<i64: 8, 128>}, {transform_indices = @transform_5, window_bounds = array<i64: 8, 256>}]} {
    %c0 = arith.constant 0 : index
    %c0_0 = arith.constant 0 : index
    %0 = vector.load %arg1[%c0, %c0_0] : memref<8x256xf32, #tpu.memory_space<vmem>>, vector<8x256xf32>
    %1 = arith.truncf %0 : vector<8x256xf32> to vector<8x256xbf16>
    %c0_1 = arith.constant 0 : index
    %c0_2 = arith.constant 0 : index
    %2 = vector.load %arg3[%c0_1, %c0_2] : memref<256x128xbf16, #tpu.memory_space<vmem>>, vector<256x128xbf16>
    %cst = arith.constant dense<0.000000e+00> : vector<8x128xf32>
    %3 = tpu.matmul %1, %2, %cst {dimension_numbers = #tpu.dot_dimension_numbers<[1], [0], [0], [1], [0, 0, 1, 1], [], []>} : vector<8x256xbf16>, vector<256x128xbf16>, vector<8x128xf32> -> vector<8x128xf32>
    %c0_3 = arith.constant 0 : index
    %c0_4 = arith.constant 0 : index
    %4 = vector.load %arg5[%c0_3, %c0_4] : memref<8x128xf32, #tpu.memory_space<vmem>>, vector<8x128xf32>
    tpu.vector_store %arg5[%c0_3, %c0_4], %3 {strides = array<i32>} : memref<8x128xf32, #tpu.memory_space<vmem>>, vector<8x128xf32>,
    %c0_5 = arith.constant 0 : index
    %c0_6 = arith.constant 0 : index
    %5 = vector.load %arg2[%c0_5, %c0_6] : memref<256x2048xbf16, #tpu.memory_space<vmem>>, vector<256x2048xbf16>
    %cst_7 = arith.constant dense<0.000000e+00> : vector<8x2048xf32>
    %6 = tpu.matmul %1, %5, %cst_7 {dimension_numbers = #tpu.dot_dimension_numbers<[1], [0], [0], [1], [0, 0, 1, 1], [], []>} : vector<8x256xbf16>, vector<256x2048xbf16>, vector<8x2048xf32> -> vector<8x2048xf32>
    %7 = vector.extract_strided_slice %6 {offsets = [0, 0], sizes = [8, 1024], strides = [1, 1]} : vector<8x2048xf32> to vector<8x1024xf32>
    %8 = vector.extract_strided_slice %6 {offsets = [0, 1024], sizes = [8, 1024], strides = [1, 1]} : vector<8x2048xf32> to vector<8x1024xf32>
    %9 = arith.mulf %7, %7 : vector<8x1024xf32>
    %10 = arith.mulf %8, %8 : vector<8x1024xf32>
    %11 = arith.addf %9, %10 : vector<8x1024xf32>
    %12 = math.sqrt %11 : vector<8x1024xf32>
    %13 = arith.truncf %12 : vector<8x1024xf32> to vector<8x1024xbf16>
    %c0_8 = arith.constant 0 : index
    %c0_9 = arith.constant 0 : index
    %14 = vector.load %arg4[%c0_8, %c0_9] : memref<1024x256xbf16, #tpu.memory_space<vmem>>, vector<1024x256xbf16>
    %cst_10 = arith.constant dense<0.000000e+00> : vector<8x256xf32>
    %15 = tpu.matmul %13, %14, %cst_10 {dimension_numbers = #tpu.dot_dimension_numbers<[1], [0], [0], [1], [0, 0, 1, 1], [], []>} : vector<8x1024xbf16>, vector<1024x256xbf16>, vector<8x256xf32> -> vector<8x256xf32>
    %c0_11 = arith.constant 0 : index
    %c0_12 = arith.constant 0 : index
    %16 = vector.load %arg6[%c0_11, %c0_12] : memref<8x256xf32, #tpu.memory_space<vmem>>, vector<8x256xf32>
    tpu.vector_store %arg6[%c0_11, %c0_12], %15 {strides = array<i32>} : memref<8x256xf32, #tpu.memory_space<vmem>>, vector<8x256xf32>,
    return
  }
  func.func @transform_0(%arg0: i32) -> (i32, i32) {
    %c0_i32 = arith.constant 0 : i32
    %c0_i32_0 = arith.constant 0 : i32
    return %arg0, %c0_i32 : i32, i32
  }
  func.func @transform_1(%arg0: i32) -> (i32, i32) {
    %c0_i32 = arith.constant 0 : i32
    %c0_i32_0 = arith.constant 0 : i32
    %c0_i32_1 = arith.constant 0 : i32
    return %c0_i32, %c0_i32_0 : i32, i32
  }
  func.func @transform_2(%arg0: i32) -> (i32, i32) {
    %c0_i32 = arith.constant 0 : i32
    %c0_i32_0 = arith.constant 0 : i32
    %c0_i32_1 = arith.constant 0 : i32
    return %c0_i32, %c0_i32_0 : i32, i32
  }
  func.func @transform_3(%arg0: i32) -> (i32, i32) {
    %c0_i32 = arith.constant 0 : i32
    %c0_i32_0 = arith.constant 0 : i32
    %c0_i32_1 = arith.constant 0 : i32
    return %c0_i32, %c0_i32_0 : i32, i32
  }
  func.func @transform_4(%arg0: i32) -> (i32, i32) {
    %c0_i32 = arith.constant 0 : i32
    %c0_i32_0 = arith.constant 0 : i32
    return %arg0, %c0_i32 : i32, i32
  }
  func.func @transform_5(%arg0: i32) -> (i32, i32) {
    %c0_i32 = arith.constant 0 : i32
    %c0_i32_0 = arith.constant 0 : i32
    return %arg0, %c0_i32 : i32, i32
  }
}

</mosaic_0001>

<bundles_post_ra>
// kernel: scattering_forward.1
= control target key start
LH: loop header
LB: loop body
LE: loop exit
PB: predicated region body
PF: predicated region fallthrough
CT: control target
= control target key end

     0   :  { %11 = vsyncpa [#allocation3], 0  ;;  %s4014_s0 = inlined_call_operand.vmem [shape: f32[8,256], index: 0, kind: input, shape index: {}]   ;;  %s4015_s1 = inlined_call_operand.hbm [shape: bf16[256,2048], index: 1, kind: input, shape index: {}]   ;;  %s4016_s2 = inlined_call_operand.vmem [shape: bf16[256,128], index: 2, kind: input, shape index: {}]   ;;  %s4017_s3 = inlined_call_operand.hbm [shape: bf16[1024,256], index: 3, kind: input, shape index: {}]   ;;  %s4018_s4 = inlined_call_operand.vmem [shape: f32[8,128], index: 4, kind: output, shape index: {0}]   ;;  %s4019_s5 = inlined_call_operand.vmem [shape: f32[8,256], index: 5, kind: output, shape index: {1}]  }
   0x1   :  { %12 = vsyncpa [#allocation5], 0  ;;  %s3829_s18 = smov [#allocation2]   ;;  %s3781_s22 = scalar_lea.hbm %s4015_s1, 32768 }
   0x2   :  { %s20_s19 = sshll.u32 %s3829_s18, 4  ;;  %p3782_p0 = scmp.ne.s32.totalorder %s4015_s1, %s3781_s22  ;;  %s21_s19 = int_to_ptr.vmem [resolvable:$true] %s20_s19 }
   0x3   :  { %p3785_p1 = scmp.lt.u32.totalorder %s3781_s22, %s4015_s1 }
   0x5   :  { %p3787_p2 = pnand %p3785_p1, %p3782_p0 }
   0x7   :  { %3790 = shalt.err (!%p3787_p2)
}
   0x8   :  { %s3791_s27 = scalar_lea.vmem %s21_s19, 32768  ;;  %p3796_p4 = scmp.lt.s32.totalorder %s21_s19, %s21_s19 }
   0x9   :  { %p3792_p3 = scmp.ne.s32.totalorder %s21_s19, %s3791_s27  ;;  %p3797_p5 = scmp.lt.s32.totalorder %s3791_s27, %s3791_s27 }
   0xb   :  { %p3798_p6 = por %p3797_p5, %p3796_p4 }
   0xd   :  { %p3799_p7 = pnand %p3798_p6, %p3792_p3 }
   0xf   :  { %3802 = shalt.err (!%p3799_p7)
}
  0x10   :  { %s3830_s28 = smov 1024   ;;  %s3831_s29 = smov 64  }
  0x11   :  { %26 = dma.hbm_to_vmem [thread:$0]  %s4015_s1, 32768, %s21_s19, [#allocation3], %s3830_s28, %s3830_s28, %s3831_s29  }
  0x12   :  { %s3832_s7 = smov [#allocation4]   ;;  %s3803_s11 = scalar_lea.hbm %s4017_s3, 16384 }
  0x13   :  { %s34_s8 = sshll.u32 %s3832_s7, 4  ;;  %p3804_p8 = scmp.ne.s32.totalorder %s4017_s3, %s3803_s11  ;;  %s35_s8 = int_to_ptr.vmem [resolvable:$true] %s34_s8 }
  0x14   :  { %p3807_p9 = scmp.lt.u32.totalorder %s3803_s11, %s4017_s3 }
  0x16   :  { %p3809_p10 = pnand %p3807_p9, %p3804_p8 }
  0x18   :  { %3812 = shalt.err (!%p3809_p10)
}
  0x19   :  { %s3813_s16 = scalar_lea.vmem %s35_s8, 16384  ;;  %p3818_p12 = scmp.lt.s32.totalorder %s35_s8, %s35_s8 }
  0x1a   :  { %p3814_p11 = scmp.ne.s32.totalorder %s35_s8, %s3813_s16  ;;  %p3819_p13 = scmp.lt.s32.totalorder %s3813_s16, %s3813_s16 }
  0x1c   :  { %p3820_p0 = por %p3819_p13, %p3818_p12 }
  0x1e   :  { %p3821_p1 = pnand %p3820_p0, %p3814_p11 }
  0x20   :  { %3824 = shalt.err (!%p3821_p1)
}
  0x21   :  { %s3833_s1 = smov 128   ;;  %s3834_s17 = smov 8  }
  0x22   :  { %40 = dma.hbm_to_vmem [thread:$0]  %s4017_s3, 16384, %s35_s8, [#allocation5], %s3833_s1, %s3833_s1, %s3834_s17  }
  0x23   :  { %3825 = dma.done.wait [#allocation3], 32768  }
  0x24   :  { %3826 = vsyncadd [#allocation3], 4294934528 }
  0x25   :  { %3827 = dma.done.wait [#allocation5], 16384  }
  0x26   :  { %3828 = vsyncadd [#allocation5], 4294950912  ;;  %v3557_v0 = vld [vmem:[%s4016_s2 + $0x40] sm:$0xff]   ;;  %v3559_v2 = vld [vmem:[%s4016_s2 + $0x48] sm:$0xff]  }
  0x27   :  { %v3558_v1 = vld [vmem:[%s4016_s2] sm:$0xff]   ;;  %3517 = vmatprep.subr.bf16.mxu0 %v3557_v0  ;;  %v3560_v3 = vld [vmem:[%s4016_s2 + $0x8] sm:$0xff]   ;;  %v3561_v4 = vld [vmem:[%s4016_s2 + $0x50] sm:$0xff]  }
  0x28   :  { %3518 = vmatpush3.bf16.msra.mxu0 %v3558_v1  ;;  %v3562_v5 = vld [vmem:[%s4016_s2 + $0x10] sm:$0xff]   ;;  %v3563_v6 = vld [vmem:[%s4016_s2 + $0x58] sm:$0xff]   ;;  %v3565_v8 = vld [vmem:[%s4016_s2 + $0x60] sm:$0xff]  }
  0x29   :  { %3519 = vmatprep.subr.bf16.mxu0 %v3559_v2  ;;  %v3564_v7 = vld [vmem:[%s4016_s2 + $0x18] sm:$0xff]   ;;  %v3566_v9 = vld [vmem:[%s4016_s2 + $0x20] sm:$0xff]   ;;  %v3567_v10 = vld [vmem:[%s4016_s2 + $0x68] sm:$0xff]  }
  0x2a   :  { %v49_v11 = vld [vmem:[%s4014_s0 + $0x8] sm:$0xff]  ;;  %v225_v13 = vld [vmem:[#allocation2 + $0x20] sm:$0xff]  ;;  %v3569_v20 = vld [vmem:[%s4016_s2 + $0x70] sm:$0xff]  }
  0x2b   :  { %v3925_v12 = vpack.c.bf16 %v49_v11, %v49_v11  ;;  %v233_v14 = vld [vmem:[#allocation2 + $0x60] sm:$0xff]  ;;  %v3568_v18 = vld [vmem:[%s4016_s2 + $0x28] sm:$0xff]   ;;  %v3570_v26 = vld [vmem:[%s4016_s2 + $0x30] sm:$0xff]  }
  0x2c   :  { %3520 = vmatpush3.bf16.msra.mxu0 %v3560_v3  ;;  %v3142_v15 = vcombine.high %v225_v13, %v233_v14  ;;  %v3141_v16 = vcombine.low %v225_v13, %v233_v14  ;;  %v241_v17 = vld [vmem:[#allocation2 + $0xa0] sm:$0xff]  ;;  %v3571_v29 = vld [vmem:[%s4016_s2 + $0x78] sm:$0xff]  }
  0x2d   :  { %3521 = vmatprep.subr.bf16.mxu0 %v3561_v4  ;;  %212 = vmatprep.mubr.bf16.mxu0 %v3925_v12  ;;  %v249_v19 = vld [vmem:[#allocation2 + $0xe0] sm:$0xff]  ;;  %v3572_v33 = vld [vmem:[%s4016_s2 + $0x38] sm:$0xff]  }
  0x2e   :  { %1921 = vmatprep.subr.bf16.mxu1 %v3142_v15  ;;  %v3158_v21 = vcombine.high %v241_v17, %v249_v19  ;;  %v257_v22 = vld [vmem:[#allocation2 + $0x120] sm:$0xff]  ;;  %v3157_v24 = vcombine.low %v241_v17, %v249_v19  ;;  %1953 = vmatprep.mubr.bf16.mxu1 %v3925_v12 }
  0x2f   :  { %v265_v23 = vld [vmem:[#allocation2 + $0x160] sm:$0xff]  ;;  %1922 = vmatpush1.bf16.msra.mxu1 %v3141_v16 }
  0x30   :  { %3522 = vmatpush3.bf16.msra.mxu0 %v3562_v5  ;;  %1923 = vmatprep.subr.bf16.mxu1 %v3158_v21  ;;  %v3174_v25 = vcombine.high %v257_v22, %v265_v23  ;;  %v273_v27 = vld [vmem:[#allocation2 + $0x1a0] sm:$0xff]  ;;  %v3173_v32 = vcombine.low %v257_v22, %v265_v23 }
  0x31   :  { %3523 = vmatprep.subr.bf16.mxu0 %v3563_v6  ;;  %v281_v28 = vld [vmem:[#allocation2 + $0x1e0] sm:$0xff] }
  0x32   :  { %v221_v30 = vld [vmem:[#allocation2] sm:$0xff]  ;;  %v3190_v34 = vcombine.high %v273_v27, %v281_v28  ;;  %v3189_v41 = vcombine.low %v273_v27, %v281_v28 }
  0x33   :  { %v229_v31 = vld [vmem:[#allocation2 + $0x40] sm:$0xff]  ;;  %1924 = vmatpush1.bf16.msra.mxu1 %v3157_v24 }
  0x34   :  { %3524 = vmatpush3.bf16.msra.mxu0 %v3564_v7  ;;  %1925 = vmatprep.subr.bf16.mxu1 %v3174_v25  ;;  %v48_v35 = vld [vmem:[%s4014_s0] sm:$0xff]  ;;  %v3134_v38 = vcombine.high %v221_v30, %v229_v31  ;;  %v3133_v44 = vcombine.low %v221_v30, %v229_v31 }
  0x35   :  { %3525 = vmatprep.subr.bf16.mxu0 %v3565_v8  ;;  %v289_v36 = vld [vmem:[#allocation2 + $0x220] sm:$0xff]  ;;  %v3947_v42 = vpack.c.bf16 %v48_v35, %v48_v35 }
  0x36   :  { %v297_v37 = vld [vmem:[#allocation2 + $0x260] sm:$0xff] }
  0x37   :  { %v237_v39 = vld [vmem:[#allocation2 + $0x80] sm:$0xff]  ;;  %1926 = vmatpush1.bf16.msra.mxu1 %v3173_v32  ;;  %v3206_v43 = vcombine.high %v289_v36, %v297_v37  ;;  %v3205_v50 = vcombine.low %v289_v36, %v297_v37 }
  0x38   :  { %3526 = vmatpush3.bf16.msra.mxu0 %v3566_v9  ;;  %v245_v40 = vld [vmem:[#allocation2 + $0xc0] sm:$0xff]  ;;  %1927 = vmatprep.subr.bf16.mxu1 %v3190_v34 }
  0x39   :  { %3527 = vmatprep.subr.bf16.mxu0 %v3567_v10  ;;  %v305_v45 = vld [vmem:[#allocation2 + $0x2a0] sm:$0xff]  ;;  %v3150_v47 = vcombine.high %v237_v39, %v245_v40  ;;  %v3149_v52 = vcombine.low %v237_v39, %v245_v40 }
  0x3a   :  { %v313_v46 = vld [vmem:[#allocation2 + $0x2e0] sm:$0xff] }
  0x3b   :  { %v253_v48 = vld [vmem:[#allocation2 + $0x100] sm:$0xff]  ;;  %1928 = vmatpush1.bf16.msra.mxu1 %v3189_v41  ;;  %v3222_v51 = vcombine.high %v305_v45, %v313_v46  ;;  %v3221_v58 = vcombine.low %v305_v45, %v313_v46 }
  0x3c   :  { %3528 = vmatpush3.bf16.msra.mxu0 %v3568_v18  ;;  %v261_v49 = vld [vmem:[#allocation2 + $0x140] sm:$0xff]  ;;  %1929 = vmatprep.subr.bf16.mxu1 %v3206_v43 }
  0x3d   :  { %3529 = vmatprep.subr.bf16.mxu0 %v3569_v20  ;;  %v321_v53 = vld [vmem:[#allocation2 + $0x320] sm:$0xff]  ;;  %v3166_v55 = vcombine.high %v253_v48, %v261_v49  ;;  %v3165_v60 = vcombine.low %v253_v48, %v261_v49 }
  0x3e   :  { %v329_v54 = vld [vmem:[#allocation2 + $0x360] sm:$0xff] }
  0x3f   :  { %v269_v56 = vld [vmem:[#allocation2 + $0x180] sm:$0xff]  ;;  %1930 = vmatpush1.bf16.msra.mxu1 %v3205_v50  ;;  %v3238_v59 = vcombine.high %v321_v53, %v329_v54  ;;  %v3237_v2 = vcombine.low %v321_v53, %v329_v54 }
  0x40   :  { %3530 = vmatpush3.bf16.msra.mxu0 %v3570_v26  ;;  %v277_v57 = vld [vmem:[#allocation2 + $0x1c0] sm:$0xff]  ;;  %1931 = vmatprep.subr.bf16.mxu1 %v3222_v51 }
  0x41   :  { %3531 = vmatprep.subr.bf16.mxu0 %v3571_v29  ;;  %v337_v61 = vld [vmem:[#allocation2 + $0x3a0] sm:$0xff]  ;;  %v3182_v63 = vcombine.high %v269_v56, %v277_v57  ;;  %v3181_v4 = vcombine.low %v269_v56, %v277_v57 }
  0x42   :  { %v345_v62 = vld [vmem:[#allocation2 + $0x3e0] sm:$0xff] }
  0x43   :  { %v285_v0 = vld [vmem:[#allocation2 + $0x200] sm:$0xff]  ;;  %1932 = vmatpush1.bf16.msra.mxu1 %v3221_v58  ;;  %v3254_v3 = vcombine.high %v337_v61, %v345_v62  ;;  %v3253_v10 = vcombine.low %v337_v61, %v345_v62 }
  0x44   :  { %3532 = vmatpush3.bf16.msra.mxu0 %v3572_v33  ;;  %v293_v1 = vld [vmem:[#allocation2 + $0x240] sm:$0xff]  ;;  %1933 = vmatprep.subr.bf16.mxu1 %v3238_v59 }
  0x45   :  { %1757 = vmatprep.subr.bf16.mxu0 %v3134_v38  ;;  %v353_v5 = vld [vmem:[#allocation2 + $0x420] sm:$0xff]  ;;  %v3198_v7 = vcombine.high %v285_v0, %v293_v1  ;;  %v3197_v13 = vcombine.low %v285_v0, %v293_v1 }
  0x46   :  { %v361_v6 = vld [vmem:[#allocation2 + $0x460] sm:$0xff] }
  0x47   :  { %213 = vmatmul.mubr.bf16.vlgmr.msra.gmra.mrb[0].mxu0 %v3947_v42  ;;  %v301_v8 = vld [vmem:[#allocation2 + $0x280] sm:$0xff]  ;;  %1934 = vmatpush1.bf16.msra.mxu1 %v3237_v2  ;;  %v3270_v11 = vcombine.high %v353_v5, %v361_v6  ;;  %v3269_v19 = vcombine.low %v353_v5, %v361_v6 }
  0x48   :  { %1758 = vmatpush1.bf16.msra.mxu0 %v3133_v44  ;;  %1789 = vmatprep.mubr.bf16.mxu0 %v3925_v12  ;;  %v309_v9 = vld [vmem:[#allocation2 + $0x2c0] sm:$0xff] }
  0x49   :  { %1759 = vmatprep.subr.bf16.mxu0 %v3150_v47  ;;  %1935 = vmatprep.subr.bf16.mxu1 %v3254_v3  ;;  %v369_v14 = vld [vmem:[#allocation2 + $0x4a0] sm:$0xff]  ;;  %v3214_v16 = vcombine.high %v301_v8, %v309_v9  ;;  %v3213_v21 = vcombine.low %v301_v8, %v309_v9  ;;  %v227_v8 = vld [vmem:[#allocation2 + $0x30] sm:$0xff] }
  0x4a   :  { %v377_v15 = vld [vmem:[#allocation2 + $0x4e0] sm:$0xff]  ;;  %v235_v9 = vld [vmem:[#allocation2 + $0x70] sm:$0xff] }
  0x4b   :  { %v317_v17 = vld [vmem:[#allocation2 + $0x300] sm:$0xff]  ;;  %1936 = vmatpush1.bf16.msra.mxu1 %v3253_v10  ;;  %v3286_v20 = vcombine.high %v369_v14, %v377_v15  ;;  %v3285_v27 = vcombine.low %v369_v14, %v377_v15  ;;  %v3146_v14 = vcombine.high %v227_v8, %v235_v9 }
  0x4c   :  { %1760 = vmatpush1.bf16.msra.mxu0 %v3149_v52  ;;  %v325_v18 = vld [vmem:[#allocation2 + $0x340] sm:$0xff]  ;;  %1937 = vmatprep.subr.bf16.mxu1 %v3270_v11 }
  0x4d   :  { %1761 = vmatprep.subr.bf16.mxu0 %v3166_v55  ;;  %v385_v22 = vld [vmem:[#allocation2 + $0x520] sm:$0xff]  ;;  %v3230_v24 = vcombine.high %v317_v17, %v325_v18  ;;  %v3229_v29 = vcombine.low %v317_v17, %v325_v18  ;;  %v243_v17 = vld [vmem:[#allocation2 + $0xb0] sm:$0xff] }
  0x4e   :  { %v393_v23 = vld [vmem:[#allocation2 + $0x560] sm:$0xff]  ;;  %v251_v18 = vld [vmem:[#allocation2 + $0xf0] sm:$0xff] }
  0x4f   :  { %v333_v25 = vld [vmem:[#allocation2 + $0x380] sm:$0xff]  ;;  %1938 = vmatpush1.bf16.msra.mxu1 %v3269_v19  ;;  %v3302_v28 = vcombine.high %v385_v22, %v393_v23  ;;  %v3301_v35 = vcombine.low %v385_v22, %v393_v23  ;;  %v3162_v22 = vcombine.high %v243_v17, %v251_v18 }
  0x50   :  { %1762 = vmatpush1.bf16.msra.mxu0 %v3165_v60  ;;  %v341_v26 = vld [vmem:[#allocation2 + $0x3c0] sm:$0xff]  ;;  %1939 = vmatprep.subr.bf16.mxu1 %v3286_v20 }
  0x51   :  { %1763 = vmatprep.subr.bf16.mxu0 %v3182_v63  ;;  %v401_v30 = vld [vmem:[#allocation2 + $0x5a0] sm:$0xff]  ;;  %v3246_v32 = vcombine.high %v333_v25, %v341_v26  ;;  %v3245_v37 = vcombine.low %v333_v25, %v341_v26  ;;  %v259_v25 = vld [vmem:[#allocation2 + $0x130] sm:$0xff] }
  0x52   :  { %v409_v31 = vld [vmem:[#allocation2 + $0x5e0] sm:$0xff]  ;;  %v267_v26 = vld [vmem:[#allocation2 + $0x170] sm:$0xff] }
  0x53   :  { %v349_v33 = vld [vmem:[#allocation2 + $0x400] sm:$0xff]  ;;  %1940 = vmatpush1.bf16.msra.mxu1 %v3285_v27  ;;  %v3318_v36 = vcombine.high %v401_v30, %v409_v31  ;;  %v3317_v44 = vcombine.low %v401_v30, %v409_v31  ;;  %v3178_v30 = vcombine.high %v259_v25, %v267_v26 }
  0x54   :  { %1764 = vmatpush1.bf16.msra.mxu0 %v3181_v4  ;;  %v357_v34 = vld [vmem:[#allocation2 + $0x440] sm:$0xff]  ;;  %1941 = vmatprep.subr.bf16.mxu1 %v3302_v28 }
  0x55   :  { %1765 = vmatprep.subr.bf16.mxu0 %v3198_v7  ;;  %v365_v38 = vld [vmem:[#allocation2 + $0x480] sm:$0xff]  ;;  %v3262_v41 = vcombine.high %v349_v33, %v357_v34  ;;  %v3261_v46 = vcombine.low %v349_v33, %v357_v34  ;;  %v275_v33 = vld [vmem:[#allocation2 + $0x1b0] sm:$0xff] }
  0x56   :  { %v417_v39 = vld [vmem:[#allocation2 + $0x620] sm:$0xff]  ;;  %v283_v34 = vld [vmem:[#allocation2 + $0x1f0] sm:$0xff] }
  0x57   :  { %v425_v40 = vld [vmem:[#allocation2 + $0x660] sm:$0xff]  ;;  %1942 = vmatpush1.bf16.msra.mxu1 %v3301_v35 }
  0x58   :  { %1766 = vmatpush1.bf16.msra.mxu0 %v3197_v13  ;;  %v373_v43 = vld [vmem:[#allocation2 + $0x4c0] sm:$0xff]  ;;  %1943 = vmatprep.subr.bf16.mxu1 %v3318_v36  ;;  %v3334_v45 = vcombine.high %v417_v39, %v425_v40  ;;  %v3333_v52 = vcombine.low %v417_v39, %v425_v40  ;;  %v230_v36 = vld [vmem:[#allocation2 + $0x48] sm:$0xff] }
  0x59   :  { %1767 = vmatprep.subr.bf16.mxu0 %v3214_v16  ;;  %v381_v47 = vld [vmem:[#allocation2 + $0x500] sm:$0xff]  ;;  %v3278_v50 = vcombine.high %v365_v38, %v373_v43  ;;  %v3277_v54 = vcombine.low %v365_v38, %v373_v43  ;;  %v3194_v38 = vcombine.high %v275_v33, %v283_v34  ;;  %v238_v40 = vld [vmem:[#allocation2 + $0x88] sm:$0xff]  ;;  %v299_v43 = vld [vmem:[#allocation2 + $0x270] sm:$0xff] }
  0x5a   :  { %v433_v48 = vld [vmem:[#allocation2 + $0x6a0] sm:$0xff] }
  0x5b   :  { %v441_v49 = vld [vmem:[#allocation2 + $0x6e0] sm:$0xff]  ;;  %1944 = vmatpush1.bf16.msra.mxu1 %v3317_v44 }
  0x5c   :  { %1768 = vmatpush1.bf16.msra.mxu0 %v3213_v21  ;;  %v389_v51 = vld [vmem:[#allocation2 + $0x540] sm:$0xff]  ;;  %1945 = vmatprep.subr.bf16.mxu1 %v3334_v45  ;;  %v3350_v53 = vcombine.high %v433_v48, %v441_v49  ;;  %v3349_v60 = vcombine.low %v433_v48, %v441_v49  ;;  %v3145_v21 = vcombine.low %v227_v8, %v235_v9  ;;  %v246_v45 = vld [vmem:[#allocation2 + $0xc8] sm:$0xff] }
  0x5d   :  { %1769 = vmatprep.subr.bf16.mxu0 %v3230_v24  ;;  %v397_v55 = vld [vmem:[#allocation2 + $0x580] sm:$0xff]  ;;  %v3294_v58 = vcombine.high %v381_v47, %v389_v51  ;;  %v3293_v62 = vcombine.low %v381_v47, %v389_v51  ;;  %v254_v49 = vld [vmem:[#allocation2 + $0x108] sm:$0xff]  ;;  %v307_v51 = vld [vmem:[#allocation2 + $0x2b0] sm:$0xff] }
  0x5e   :  { %v449_v56 = vld [vmem:[#allocation2 + $0x720] sm:$0xff]  ;;  %v302_v9 = vld [vmem:[#allocation2 + $0x288] sm:$0xff] }
  0x5f   :  { %v457_v57 = vld [vmem:[#allocation2 + $0x760] sm:$0xff]  ;;  %1946 = vmatpush1.bf16.msra.mxu1 %v3333_v52  ;;  %v315_v52 = vld [vmem:[#allocation2 + $0x2f0] sm:$0xff] }
  0x60   :  { %1770 = vmatpush1.bf16.msra.mxu0 %v3229_v29  ;;  %v405_v59 = vld [vmem:[#allocation2 + $0x5c0] sm:$0xff]  ;;  %1947 = vmatprep.subr.bf16.mxu1 %v3350_v53  ;;  %v3366_v61 = vcombine.high %v449_v56, %v457_v57  ;;  %v3365_v4 = vcombine.low %v449_v56, %v457_v57  ;;  %v3161_v29 = vcombine.low %v243_v17, %v251_v18  ;;  %v270_v57 = vld [vmem:[#allocation2 + $0x188] sm:$0xff] }
  0x61   :  { %1771 = vmatprep.subr.bf16.mxu0 %v3246_v32  ;;  %v413_v63 = vld [vmem:[#allocation2 + $0x600] sm:$0xff]  ;;  %v3310_v2 = vcombine.high %v397_v55, %v405_v59  ;;  %v3309_v6 = vcombine.low %v397_v55, %v405_v59  ;;  %v222_v32 = vld [vmem:[#allocation2 + $0x8] sm:$0xff]  ;;  %v3152_v53 = vcombine.high %v238_v40, %v246_v45  ;;  %v3226_v55 = vcombine.high %v307_v51, %v315_v52  ;;  %v323_v59 = vld [vmem:[#allocation2 + $0x330] sm:$0xff] }
  0x62   :  { %v465_v0 = vld [vmem:[#allocation2 + $0x7a0] sm:$0xff]  ;;  %v3136_v44 = vcombine.high %v222_v32, %v230_v36  ;;  %v3135_v48 = vcombine.low %v222_v32, %v230_v36  ;;  %v3151_v56 = vcombine.low %v238_v40, %v246_v45  ;;  %v318_v18 = vld [vmem:[#allocation2 + $0x308] sm:$0xff] }
  0x63   :  { %v473_v1 = vld [vmem:[#allocation2 + $0x7e0] sm:$0xff]  ;;  %1948 = vmatpush1.bf16.msra.mxu1 %v3349_v60  ;;  %v331_v60 = vld [vmem:[#allocation2 + $0x370] sm:$0xff] }
  0x64   :  { %1772 = vmatpush1.bf16.msra.mxu0 %v3245_v37  ;;  %v421_v3 = vld [vmem:[#allocation2 + $0x640] sm:$0xff]  ;;  %1949 = vmatprep.subr.bf16.mxu1 %v3366_v61  ;;  %v3382_v5 = vcombine.high %v465_v0, %v473_v1  ;;  %v3381_v13 = vcombine.low %v465_v0, %v473_v1  ;;  %v3177_v37 = vcombine.low %v259_v25, %v267_v26  ;;  %v286_v1 = vld [vmem:[#allocation2 + $0x208] sm:$0xff]  ;;  %v387_v26 = vld [vmem:[#allocation2 + $0x530] sm:$0xff] }
  0x65   :  { %1773 = vmatprep.subr.bf16.mxu0 %v3262_v41  ;;  %v429_v7 = vld [vmem:[#allocation2 + $0x680] sm:$0xff]  ;;  %v3326_v10 = vcombine.high %v413_v63, %v421_v3  ;;  %v3325_v15 = vcombine.low %v413_v63, %v421_v3  ;;  %v291_v41 = vld [vmem:[#allocation2 + $0x230] sm:$0xff]  ;;  %v3242_v63 = vcombine.high %v323_v59, %v331_v60 }
  0x66   :  { %v437_v11 = vld [vmem:[#allocation2 + $0x6c0] sm:$0xff]  ;;  %v3210_v47 = vcombine.high %v291_v41, %v299_v43  ;;  %v339_v3 = vld [vmem:[#allocation2 + $0x3b0] sm:$0xff] }
  0x67   :  { %1950 = vmatpush1.bf16.msra.mxu1 %v3365_v4  ;;  %v445_v16 = vld [vmem:[#allocation2 + $0x700] sm:$0xff]  ;;  %v3342_v19 = vcombine.high %v429_v7, %v437_v11  ;;  %v3341_v23 = vcombine.low %v429_v7, %v437_v11  ;;  %v347_v4 = vld [vmem:[#allocation2 + $0x3f0] sm:$0xff] }
  0x68   :  { %1774 = vmatpush1.bf16.msra.mxu0 %v3261_v46  ;;  %1951 = vmatprep.subr.bf16.mxu1 %v3382_v5  ;;  %v453_v20 = vld [vmem:[#allocation2 + $0x740] sm:$0xff]  ;;  %v3193_v46 = vcombine.low %v275_v33, %v283_v34  ;;  %v3258_v7 = vcombine.high %v339_v3, %v347_v4  ;;  %v355_v11 = vld [vmem:[#allocation2 + $0x430] sm:$0xff] }
  0x69   :  { %1775 = vmatprep.subr.bf16.mxu0 %v3278_v50  ;;  %v461_v24 = vld [vmem:[#allocation2 + $0x780] sm:$0xff]  ;;  %v3358_v27 = vcombine.high %v445_v16, %v453_v20  ;;  %v3357_v31 = vcombine.low %v445_v16, %v453_v20  ;;  %v262_v50 = vld [vmem:[#allocation2 + $0x148] sm:$0xff]  ;;  %v371_v20 = vld [vmem:[#allocation2 + $0x4b0] sm:$0xff] }
  0x6a   :  { %v469_v28 = vld [vmem:[#allocation2 + $0x7c0] sm:$0xff]  ;;  %v3168_v61 = vcombine.high %v254_v49, %v262_v50  ;;  %v3167_v0 = vcombine.low %v254_v49, %v262_v50  ;;  %v403_v34 = vld [vmem:[#allocation2 + $0x5b0] sm:$0xff] }
  0x6b   :  { %1952 = vmatpush1.bf16.msra.mxu1 %v3381_v13  ;;  %v3374_v35 = vcombine.high %v461_v24, %v469_v28  ;;  %v3373_v39 = vcombine.low %v461_v24, %v469_v28  ;;  %v363_v13 = vld [vmem:[#allocation2 + $0x470] sm:$0xff] }
  0x6c   :  { %1776 = vmatpush1.bf16.msra.mxu0 %v3277_v54  ;;  %2003 = vmatprep.subr.bf16.mxu1 %v3146_v14  ;;  %v3209_v54 = vcombine.low %v291_v41, %v299_v43  ;;  %v3274_v16 = vcombine.high %v355_v11, %v363_v13  ;;  %v419_v43 = vld [vmem:[#allocation2 + $0x630] sm:$0xff] }
  0x6d   :  { %1777 = vmatprep.subr.bf16.mxu0 %v3294_v58  ;;  %v278_v58 = vld [vmem:[#allocation2 + $0x1c8] sm:$0xff] }
  0x6e   :  { %1954 = vmatmul.mubr.bf16.vlgmr.msra.gmra.mrb[0].mxu1 %v3947_v42  ;;  %v3184_v5 = vcombine.high %v270_v57, %v278_v58  ;;  %v3183_v8 = vcombine.low %v270_v57, %v278_v58 }
  0x6f   :  { %2004 = vmatpush1.bf16.msra.mxu1 %v3145_v21  ;;  %2035 = vmatprep.mubr.bf16.mxu1 %v3925_v12  ;;  %v379_v21 = vld [vmem:[#allocation2 + $0x4f0] sm:$0xff] }
  0x70   :  { %1778 = vmatpush1.bf16.msra.mxu0 %v3293_v62  ;;  %2005 = vmatprep.subr.bf16.mxu1 %v3162_v22  ;;  %v3225_v62 = vcombine.low %v307_v51, %v315_v52  ;;  %v3290_v24 = vcombine.high %v371_v20, %v379_v21  ;;  %v435_v51 = vld [vmem:[#allocation2 + $0x6b0] sm:$0xff] }
  0x71   :  { %1779 = vmatprep.subr.bf16.mxu0 %v3310_v2  ;;  %v294_v2 = vld [vmem:[#allocation2 + $0x248] sm:$0xff]  ;;  %v443_v52 = vld [vmem:[#allocation2 + $0x6f0] sm:$0xff] }
  0x72   :  { %v3200_v14 = vcombine.high %v286_v1, %v294_v2  ;;  %v3199_v17 = vcombine.low %v286_v1, %v294_v2  ;;  %v3354_v57 = vcombine.high %v435_v51, %v443_v52 }
  0x73   :  { %2006 = vmatpush1.bf16.msra.mxu1 %v3161_v29  ;;  %v334_v29 = vld [vmem:[#allocation2 + $0x388] sm:$0xff] }
  0x74   :  { %1780 = vmatpush1.bf16.msra.mxu0 %v3309_v6  ;;  %2007 = vmatprep.subr.bf16.mxu1 %v3178_v30  ;;  %v3241_v6 = vcombine.low %v323_v59, %v331_v60  ;;  %v342_v30 = vld [vmem:[#allocation2 + $0x3c8] sm:$0xff]  ;;  %v451_v59 = vld [vmem:[#allocation2 + $0x730] sm:$0xff] }
  0x75   :  { %1781 = vmatprep.subr.bf16.mxu0 %v3326_v10  ;;  %v310_v10 = vld [vmem:[#allocation2 + $0x2c8] sm:$0xff]  ;;  %v3248_v36 = vcombine.high %v334_v29, %v342_v30  ;;  %v3247_v41 = vcombine.low %v334_v29, %v342_v30  ;;  %v459_v60 = vld [vmem:[#allocation2 + $0x770] sm:$0xff] }
  0x76   :  { %v3216_v22 = vcombine.high %v302_v9, %v310_v10  ;;  %v3215_v25 = vcombine.low %v302_v9, %v310_v10  ;;  %v3370_v1 = vcombine.high %v451_v59, %v459_v60 }
  0x77   :  { %2008 = vmatpush1.bf16.msra.mxu1 %v3177_v37  ;;  %v350_v37 = vld [vmem:[#allocation2 + $0x408] sm:$0xff] }
  0x78   :  { %1782 = vmatpush1.bf16.msra.mxu0 %v3325_v15  ;;  %2009 = vmatprep.subr.bf16.mxu1 %v3194_v38  ;;  %v3257_v15 = vcombine.low %v339_v3, %v347_v4  ;;  %v358_v38 = vld [vmem:[#allocation2 + $0x448] sm:$0xff]  ;;  %v467_v3 = vld [vmem:[#allocation2 + $0x7b0] sm:$0xff] }
  0x79   :  { %1783 = vmatprep.subr.bf16.mxu0 %v3342_v19  ;;  %v326_v19 = vld [vmem:[#allocation2 + $0x348] sm:$0xff]  ;;  %v3264_v45 = vcombine.high %v350_v37, %v358_v38  ;;  %v3263_v50 = vcombine.low %v350_v37, %v358_v38  ;;  %v475_v4 = vld [vmem:[#allocation2 + $0x7f0] sm:$0xff] }
  0x7a   :  { %v3232_v28 = vcombine.high %v318_v18, %v326_v19  ;;  %v3231_v33 = vcombine.low %v318_v18, %v326_v19  ;;  %v3386_v9 = vcombine.high %v467_v3, %v475_v4  ;;  %v446_v19 = vld [vmem:[#allocation2 + $0x708] sm:$0xff]  ;;  %v239_v37 = vld [vmem:[#allocation2 + $0x90] sm:$0xff] }
  0x7b   :  { %2010 = vmatpush1.bf16.msra.mxu1 %v3193_v46  ;;  %v366_v46 = vld [vmem:[#allocation2 + $0x488] sm:$0xff]  ;;  %v247_v38 = vld [vmem:[#allocation2 + $0xd0] sm:$0xff] }
  0x7c   :  { %1784 = vmatpush1.bf16.msra.mxu0 %v3341_v23  ;;  %2011 = vmatprep.subr.bf16.mxu1 %v3210_v47  ;;  %v3273_v23 = vcombine.low %v355_v11, %v363_v13  ;;  %v374_v47 = vld [vmem:[#allocation2 + $0x4c8] sm:$0xff] }
  0x7d   :  { %1785 = vmatprep.subr.bf16.mxu0 %v3358_v27  ;;  %v395_v27 = vld [vmem:[#allocation2 + $0x570] sm:$0xff]  ;;  %v3279_v58 = vcombine.low %v366_v46, %v374_v47  ;;  %v430_v13 = vld [vmem:[#allocation2 + $0x688] sm:$0xff] }
  0x7e   :  { %v3306_v32 = vcombine.high %v387_v26, %v395_v27 }
  0x7f   :  { %2012 = vmatpush1.bf16.msra.mxu1 %v3209_v54  ;;  %v382_v54 = vld [vmem:[#allocation2 + $0x508] sm:$0xff] }
  0x80   :  { %1786 = vmatpush1.bf16.msra.mxu0 %v3357_v31  ;;  %2013 = vmatprep.subr.bf16.mxu1 %v3226_v55  ;;  %v3289_v31 = vcombine.low %v371_v20, %v379_v21  ;;  %v390_v55 = vld [vmem:[#allocation2 + $0x548] sm:$0xff] }
  0x81   :  { %1787 = vmatprep.subr.bf16.mxu0 %v3374_v35  ;;  %v411_v35 = vld [vmem:[#allocation2 + $0x5f0] sm:$0xff]  ;;  %v3295_v2 = vcombine.low %v382_v54, %v390_v55  ;;  %v454_v20 = vld [vmem:[#allocation2 + $0x748] sm:$0xff] }
  0x82   :  { %v3322_v40 = vcombine.high %v403_v34, %v411_v35  ;;  %v3573_v21 = vld [vmem:[#allocation4] ss:$8 sps:$4 sm:$0xff]   ;;  %v3359_v29 = vcombine.low %v446_v19, %v454_v20 }
  0x83   :  { %2014 = vmatpush1.bf16.msra.mxu1 %v3225_v62  ;;  %v398_v62 = vld [vmem:[#allocation2 + $0x588] sm:$0xff] }
  0x84   :  { %1788 = vmatpush1.bf16.msra.mxu0 %v3373_v39  ;;  %2015 = vmatprep.subr.bf16.mxu1 %v3242_v63  ;;  %v3305_v39 = vcombine.low %v387_v26, %v395_v27  ;;  %v406_v63 = vld [vmem:[#allocation2 + $0x5c8] sm:$0xff]  ;;  %v3576_v27 = vld [vmem:[#allocation4 + $0x10] ss:$8 sps:$4 sm:$0xff]  }
  0x85   :  { %1798 = vmatprep.subr.bf16.mxu0 %v3136_v44  ;;  %v427_v44 = vld [vmem:[#allocation2 + $0x670] sm:$0xff]  ;;  %v3311_v10 = vcombine.low %v398_v62, %v406_v63  ;;  %v470_v26 = vld [vmem:[#allocation2 + $0x7c8] sm:$0xff] }
  0x86   :  { %v3338_v49 = vcombine.high %v419_v43, %v427_v44 }
  0x87   :  { %1790 = vmatmul.mubr.bf16.vlgmr.msra.gmra.mrb[4].mxu0 %v3947_v42  ;;  %2016 = vmatpush1.bf16.msra.mxu1 %v3241_v6  ;;  %v414_v6 = vld [vmem:[#allocation2 + $0x608] sm:$0xff] }
  0x88   :  { %1799 = vmatpush1.bf16.msra.mxu0 %v3135_v48  ;;  %1830 = vmatprep.mubr.bf16.mxu0 %v3925_v12  ;;  %v3321_v48 = vcombine.low %v403_v34, %v411_v35  ;;  %v3584_v34 = vld [vmem:[#allocation4 + $0x34] ss:$8 sps:$4 sm:$0xff]  }
  0x89   :  { %1800 = vmatprep.subr.bf16.mxu0 %v3152_v53  ;;  %2017 = vmatprep.subr.bf16.mxu1 %v3258_v7  ;;  %v3280_v53 = vcombine.high %v366_v46, %v374_v47  ;;  %v422_v7 = vld [vmem:[#allocation2 + $0x648] sm:$0xff]  ;;  %v3590_v47 = vld [vmem:[#allocation4 + $0x54] ss:$8 sps:$4 sm:$0xff]  }
  0x8a   :  { %v3328_v11 = vcombine.high %v414_v6, %v422_v7  ;;  %v3585_v46 = vld [vmem:[#allocation4 + $0x40] ss:$8 sps:$4 sm:$0xff]  }
  0x8b   :  { %2018 = vmatpush1.bf16.msra.mxu1 %v3257_v15  ;;  %v3385_v15 = vcombine.low %v467_v3, %v475_v4  ;;  %v319_v4 = vld [vmem:[#allocation2 + $0x310] sm:$0xff] }
  0x8c   :  { %1801 = vmatpush1.bf16.msra.mxu0 %v3151_v56  ;;  %2019 = vmatprep.subr.bf16.mxu1 %v3274_v16  ;;  %v3337_v56 = vcombine.low %v419_v43, %v427_v44  ;;  %v3575_v16 = vld [vmem:[#allocation4 + $0x4] ss:$8 sps:$4 sm:$0xff]   ;;  %v3154_v43 = vcombine.high %v239_v37, %v247_v38  ;;  %v255_v44 = vld [vmem:[#allocation2 + $0x110] sm:$0xff] }
  0x8d   :  { %1802 = vmatprep.subr.bf16.mxu0 %v3168_v61  ;;  %v3296_v61 = vcombine.high %v382_v54, %v390_v55 }
  0x8f   :  { %2020 = vmatpush1.bf16.msra.mxu1 %v3273_v23 }
  0x90   :  { %1803 = vmatpush1.bf16.msra.mxu0 %v3167_v0  ;;  %2021 = vmatprep.subr.bf16.mxu1 %v3290_v24  ;;  %v3353_v0 = vcombine.low %v435_v51, %v443_v52  ;;  %v3360_v24 = vcombine.high %v446_v19, %v454_v20  ;;  %v279_v51 = vld [vmem:[#allocation2 + $0x1d0] sm:$0xff]  ;;  %v3603_v19 = vld [vmem:[#allocation4 + $0xa0] ss:$8 sps:$4 sm:$0xff]  }
  0x91   :  { %1804 = vmatprep.subr.bf16.mxu0 %v3184_v5  ;;  %v3312_v5 = vcombine.high %v398_v62, %v406_v63  ;;  %v3588_v52 = vld [vmem:[#allocation4 + $0x50] ss:$8 sps:$4 sm:$0xff]   ;;  %v3608_v20 = vld [vmem:[#allocation4 + $0xb4] ss:$8 sps:$4 sm:$0xff]  }
  0x92   :  { %v303_v62 = vld [vmem:[#allocation2 + $0x290] sm:$0xff] }
  0x93   :  { %2022 = vmatpush1.bf16.msra.mxu1 %v3289_v31  ;;  %v223_v31 = vld [vmem:[#allocation2 + $0x10] sm:$0xff] }
  0x94   :  { %1805 = vmatpush1.bf16.msra.mxu0 %v3183_v8  ;;  %2023 = vmatprep.subr.bf16.mxu1 %v3306_v32  ;;  %v3369_v8 = vcombine.low %v451_v59, %v459_v60  ;;  %v231_v32 = vld [vmem:[#allocation2 + $0x50] sm:$0xff] }
  0x95   :  { %1806 = vmatprep.subr.bf16.mxu0 %v3200_v14  ;;  %v438_v14 = vld [vmem:[#allocation2 + $0x6c8] sm:$0xff]  ;;  %v3596_v59 = vld [vmem:[#allocation4 + $0x74] ss:$8 sps:$4 sm:$0xff]  }
  0x96   :  { %v3344_v18 = vcombine.high %v430_v13, %v438_v14  ;;  %v3343_v23 = vcombine.low %v430_v13, %v438_v14  ;;  %v311_v63 = vld [vmem:[#allocation2 + $0x2d0] sm:$0xff]  ;;  %v3605_v14 = vld [vmem:[#allocation4 + $0xa4] ss:$8 sps:$4 sm:$0xff]  }
  0x97   :  { %2024 = vmatpush1.bf16.msra.mxu1 %v3305_v39  ;;  %v3582_v39 = vld [vmem:[#allocation4 + $0x30] ss:$8 sps:$4 sm:$0xff]   ;;  %v3218_v3 = vcombine.high %v303_v62, %v311_v63 }
  0x98   :  { %1807 = vmatpush1.bf16.msra.mxu0 %v3199_v17  ;;  %2025 = vmatprep.subr.bf16.mxu1 %v3322_v40  ;;  %v3327_v17 = vcombine.low %v414_v6, %v422_v7  ;;  %v3587_v40 = vld [vmem:[#allocation4 + $0x44] ss:$8 sps:$4 sm:$0xff]   ;;  %v3597_v6 = vld [vmem:[#allocation4 + $0x80] ss:$8 sps:$4 sm:$0xff]   ;;  %v3602_v7 = vld [vmem:[#allocation4 + $0x94] ss:$8 sps:$4 sm:$0xff]  }
  0x99   :  { %1808 = vmatprep.subr.bf16.mxu0 %v3216_v22  ;;  %v3578_v22 = vld [vmem:[#allocation4 + $0x14] ss:$8 sps:$4 sm:$0xff]   ;;  %v3600_v13 = vld [vmem:[#allocation4 + $0x90] ss:$8 sps:$4 sm:$0xff]  }
  0x9b   :  { %2026 = vmatpush1.bf16.msra.mxu1 %v3321_v48  ;;  %v3153_v48 = vcombine.low %v239_v37, %v247_v38  ;;  %v3612_v37 = vld [vmem:[#allocation4 + $0xd0] ss:$8 sps:$4 sm:$0xff]   ;;  %v3617_v38 = vld [vmem:[#allocation4 + $0xe4] ss:$8 sps:$4 sm:$0xff]  }
  0x9c   :  { %1809 = vmatpush1.bf16.msra.mxu0 %v3215_v25  ;;  %2027 = vmatprep.subr.bf16.mxu1 %v3338_v49  ;;  %v462_v25 = vld [vmem:[#allocation2 + $0x788] sm:$0xff] }
  0x9d   :  { %1810 = vmatprep.subr.bf16.mxu0 %v3232_v28  ;;  %v3581_v28 = vld [vmem:[#allocation4 + $0x24] ss:$8 sps:$4 sm:$0xff]   ;;  %v3376_v30 = vcombine.high %v462_v25, %v470_v26  ;;  %v3375_v35 = vcombine.low %v462_v25, %v470_v26  ;;  %v3606_v25 = vld [vmem:[#allocation4 + $0xb0] ss:$8 sps:$4 sm:$0xff]  }
  0x9e   :  { %v3611_v26 = vld [vmem:[#allocation4 + $0xc4] ss:$8 sps:$4 sm:$0xff]  }
  0x9f   :  { %2028 = vmatpush1.bf16.msra.mxu1 %v3337_v56  ;;  %v287_v56 = vld [vmem:[#allocation2 + $0x210] sm:$0xff] }
  0xa0   :  { %1811 = vmatpush1.bf16.msra.mxu0 %v3231_v33  ;;  %2029 = vmatprep.subr.bf16.mxu1 %v3354_v57  ;;  %v3579_v33 = vld [vmem:[#allocation4 + $0x20] ss:$8 sps:$4 sm:$0xff]   ;;  %v295_v57 = vld [vmem:[#allocation2 + $0x250] sm:$0xff] }
  0xa1   :  { %1812 = vmatprep.subr.bf16.mxu0 %v3248_v36  ;;  %v3138_v36 = vcombine.high %v223_v31, %v231_v32 }
  0xa3   :  { %2030 = vmatpush1.bf16.msra.mxu1 %v3353_v0  ;;  %v3594_v0 = vld [vmem:[#allocation4 + $0x70] ss:$8 sps:$4 sm:$0xff]  }
  0xa4   :  { %1813 = vmatpush1.bf16.msra.mxu0 %v3247_v41  ;;  %2031 = vmatprep.subr.bf16.mxu1 %v3370_v1  ;;  %v3137_v41 = vcombine.low %v223_v31, %v231_v32  ;;  %v3599_v1 = vld [vmem:[#allocation4 + $0x84] ss:$8 sps:$4 sm:$0xff]   ;;  %v3609_v31 = vld [vmem:[#allocation4 + $0xc0] ss:$8 sps:$4 sm:$0xff]   ;;  %v3614_v32 = vld [vmem:[#allocation4 + $0xd4] ss:$8 sps:$4 sm:$0xff]  }
  0xa5   :  { %1814 = vmatprep.subr.bf16.mxu0 %v3264_v45  ;;  %v263_v45 = vld [vmem:[#allocation2 + $0x150] sm:$0xff] }
  0xa6   :  { %v3170_v49 = vcombine.high %v255_v44, %v263_v45  ;;  %v3169_v54 = vcombine.low %v255_v44, %v263_v45  ;;  %v3615_v44 = vld [vmem:[#allocation4 + $0xe0] ss:$8 sps:$4 sm:$0xff]   ;;  %v3620_v45 = vld [vmem:[#allocation4 + $0xf4] ss:$8 sps:$4 sm:$0xff]  }
  0xa7   :  { %2032 = vmatpush1.bf16.msra.mxu1 %v3369_v8  ;;  %v3217_v8 = vcombine.low %v303_v62, %v311_v63  ;;  %v232_v62 = vld [vmem:[#allocation2 + $0x58] sm:$0xff] }
  0xa8   :  { %1815 = vmatpush1.bf16.msra.mxu0 %v3263_v50  ;;  %2033 = vmatprep.subr.bf16.mxu1 %v3386_v9  ;;  %v271_v50 = vld [vmem:[#allocation2 + $0x190] sm:$0xff] }
  0xa9   :  { %1816 = vmatprep.subr.bf16.mxu0 %v3280_v53  ;;  %v3593_v53 = vld [vmem:[#allocation4 + $0x64] ss:$8 sps:$4 sm:$0xff]   ;;  %v3186_v55 = vcombine.high %v271_v50, %v279_v51  ;;  %v3185_v60 = vcombine.low %v271_v50, %v279_v51  ;;  %v3618_v50 = vld [vmem:[#allocation4 + $0xf0] ss:$8 sps:$4 sm:$0xff]  }
  0xab   :  { %2034 = vmatpush1.bf16.msra.mxu1 %v3385_v15 }
  0xac   :  { %1817 = vmatpush1.bf16.msra.mxu0 %v3279_v58  ;;  %2941 = vmatprep.subr.bf16.mxu1 %v3575_v16  ;;  %v3591_v58 = vld [vmem:[#allocation4 + $0x60] ss:$8 sps:$4 sm:$0xff]  }
  0xad   :  { %1818 = vmatprep.subr.bf16.mxu0 %v3296_v61  ;;  %v3202_v61 = vcombine.high %v287_v56, %v295_v57 }
  0xae   :  { %2036 = vmatmul.mubr.bf16.vlgmr.msra.gmra.mrb[4].mxu1 %v3947_v42 }
  0xaf   :  { %2942 = vmatpush1.bf16.msra.mxu1 %v3573_v21 }
  0xb0   :  { %1819 = vmatpush1.bf16.msra.mxu0 %v3295_v2  ;;  %2943 = vmatprep.subr.bf16.mxu1 %v3578_v22  ;;  %v3201_v2 = vcombine.low %v287_v56, %v295_v57  ;;  %v463_v57 = vld [vmem:[#allocation2 + $0x790] sm:$0xff] }
  0xb1   :  { %1820 = vmatprep.subr.bf16.mxu0 %v3312_v5  ;;  %v327_v5 = vld [vmem:[#allocation2 + $0x350] sm:$0xff] }
  0xb2   :  { %v3234_v9 = vcombine.high %v319_v4, %v327_v5  ;;  %v3233_v15 = vcombine.low %v319_v4, %v327_v5  ;;  %v256_v5 = vld [vmem:[#allocation2 + $0x118] sm:$0xff] }
  0xb3   :  { %2944 = vmatpush1.bf16.msra.mxu1 %v3576_v27 }
  0xb4   :  { %1821 = vmatpush1.bf16.msra.mxu0 %v3311_v10  ;;  %2945 = vmatprep.subr.bf16.mxu1 %v3581_v28  ;;  %v335_v10 = vld [vmem:[#allocation2 + $0x390] sm:$0xff] }
  0xb5   :  { %1822 = vmatprep.subr.bf16.mxu0 %v3328_v11  ;;  %v343_v11 = vld [vmem:[#allocation2 + $0x3d0] sm:$0xff] }
  0xb6   :  { %v3250_v16 = vcombine.high %v335_v10, %v343_v11  ;;  %v3249_v21 = vcombine.low %v335_v10, %v343_v11  ;;  %v280_v10 = vld [vmem:[#allocation2 + $0x1d8] sm:$0xff] }
  0xb7   :  { %2946 = vmatpush1.bf16.msra.mxu1 %v3579_v33 }
  0xb8   :  { %1823 = vmatpush1.bf16.msra.mxu0 %v3327_v17  ;;  %2947 = vmatprep.subr.bf16.mxu1 %v3584_v34  ;;  %v351_v17 = vld [vmem:[#allocation2 + $0x410] sm:$0xff] }
  0xb9   :  { %1824 = vmatprep.subr.bf16.mxu0 %v3344_v18  ;;  %v359_v18 = vld [vmem:[#allocation2 + $0x450] sm:$0xff] }
  0xba   :  { %v3266_v22 = vcombine.high %v351_v17, %v359_v18  ;;  %v3265_v27 = vcombine.low %v351_v17, %v359_v18  ;;  %v304_v18 = vld [vmem:[#allocation2 + $0x298] sm:$0xff] }
  0xbb   :  { %2948 = vmatpush1.bf16.msra.mxu1 %v3582_v39 }
  0xbc   :  { %1825 = vmatpush1.bf16.msra.mxu0 %v3343_v23  ;;  %2949 = vmatprep.subr.bf16.mxu1 %v3587_v40  ;;  %v367_v23 = vld [vmem:[#allocation2 + $0x490] sm:$0xff] }
  0xbd   :  { %1826 = vmatprep.subr.bf16.mxu0 %v3360_v24  ;;  %v375_v24 = vld [vmem:[#allocation2 + $0x4d0] sm:$0xff] }
  0xbe   :  { %v3282_v28 = vcombine.high %v367_v23, %v375_v24  ;;  %v3281_v33 = vcombine.low %v367_v23, %v375_v24  ;;  %v328_v23 = vld [vmem:[#allocation2 + $0x358] sm:$0xff] }
  0xbf   :  { %2950 = vmatpush1.bf16.msra.mxu1 %v3585_v46 }
  0xc0   :  { %1827 = vmatpush1.bf16.msra.mxu0 %v3359_v29  ;;  %2951 = vmatprep.subr.bf16.mxu1 %v3590_v47  ;;  %v383_v29 = vld [vmem:[#allocation2 + $0x510] sm:$0xff] }
  0xc1   :  { %1828 = vmatprep.subr.bf16.mxu0 %v3376_v30  ;;  %v391_v30 = vld [vmem:[#allocation2 + $0x550] sm:$0xff] }
  0xc2   :  { %v3298_v34 = vcombine.high %v383_v29, %v391_v30  ;;  %v3297_v39 = vcombine.low %v383_v29, %v391_v30 }
  0xc3   :  { %2952 = vmatpush1.bf16.msra.mxu1 %v3588_v52 }
  0xc4   :  { %1829 = vmatpush1.bf16.msra.mxu0 %v3375_v35  ;;  %2953 = vmatprep.subr.bf16.mxu1 %v3593_v53  ;;  %v399_v35 = vld [vmem:[#allocation2 + $0x590] sm:$0xff] }
  0xc5   :  { %1839 = vmatprep.subr.bf16.mxu0 %v3138_v36  ;;  %v407_v36 = vld [vmem:[#allocation2 + $0x5d0] sm:$0xff] }
  0xc6   :  { %v3314_v40 = vcombine.high %v399_v35, %v407_v36  ;;  %v3313_v46 = vcombine.low %v399_v35, %v407_v36  ;;  %v447_v53 = vld [vmem:[#allocation2 + $0x710] sm:$0xff]  ;;  %v352_v35 = vld [vmem:[#allocation2 + $0x418] sm:$0xff] }
  0xc7   :  { %1831 = vmatmul.mubr.bf16.vlgmr.msra.gmra.mrb[8].mxu0 %v3947_v42  ;;  %2954 = vmatpush1.bf16.msra.mxu1 %v3591_v58  ;;  %v471_v58 = vld [vmem:[#allocation2 + $0x7d0] sm:$0xff]  ;;  %v360_v36 = vld [vmem:[#allocation2 + $0x458] sm:$0xff] }
  0xc8   :  { %1840 = vmatpush1.bf16.msra.mxu0 %v3137_v41  ;;  %1871 = vmatprep.mubr.bf16.mxu0 %v3925_v12  ;;  %v415_v41 = vld [vmem:[#allocation2 + $0x610] sm:$0xff]  ;;  %v3377_v63 = vcombine.low %v463_v57, %v471_v58 }
  0xc9   :  { %1841 = vmatprep.subr.bf16.mxu0 %v3154_v43  ;;  %2955 = vmatprep.subr.bf16.mxu1 %v3596_v59  ;;  %v423_v43 = vld [vmem:[#allocation2 + $0x650] sm:$0xff] }
  0xca   :  { %v3330_v47 = vcombine.high %v415_v41, %v423_v43  ;;  %v3329_v51 = vcombine.low %v415_v41, %v423_v43  ;;  %v3267_v41 = vcombine.low %v352_v35, %v360_v36 }
  0xcb   :  { %2956 = vmatpush1.bf16.msra.mxu1 %v3594_v0 }
  0xcc   :  { %1842 = vmatpush1.bf16.msra.mxu0 %v3153_v48  ;;  %2957 = vmatprep.subr.bf16.mxu1 %v3599_v1  ;;  %v431_v48 = vld [vmem:[#allocation2 + $0x690] sm:$0xff]  ;;  %v240_v1 = vld [vmem:[#allocation2 + $0x98] sm:$0xff] }
  0xcd   :  { %1843 = vmatprep.subr.bf16.mxu0 %v3170_v49  ;;  %v439_v49 = vld [vmem:[#allocation2 + $0x6d0] sm:$0xff] }
  0xce   :  { %v3346_v52 = vcombine.high %v431_v48, %v439_v49 }
  0xcf   :  { %2958 = vmatpush1.bf16.msra.mxu1 %v3597_v6  ;;  %v264_v6 = vld [vmem:[#allocation2 + $0x158] sm:$0xff] }
  0xd0   :  { %1844 = vmatpush1.bf16.msra.mxu0 %v3169_v54  ;;  %2959 = vmatprep.subr.bf16.mxu1 %v3602_v7  ;;  %v455_v54 = vld [vmem:[#allocation2 + $0x750] sm:$0xff]  ;;  %v3171_v11 = vcombine.low %v256_v5, %v264_v6 }
  0xd1   :  { %1845 = vmatprep.subr.bf16.mxu0 %v3186_v55  ;;  %v3345_v55 = vcombine.low %v431_v48, %v439_v49  ;;  %v3362_v56 = vcombine.high %v447_v53, %v455_v54  ;;  %v3361_v59 = vcombine.low %v447_v53, %v455_v54  ;;  %v400_v48 = vld [vmem:[#allocation2 + $0x598] sm:$0xff] }
  0xd2   :  { %v408_v49 = vld [vmem:[#allocation2 + $0x5d8] sm:$0xff] }
  0xd3   :  { %2960 = vmatpush1.bf16.msra.mxu1 %v3600_v13  ;;  %v424_v53 = vld [vmem:[#allocation2 + $0x658] sm:$0xff]  ;;  %v3315_v54 = vcombine.low %v400_v48, %v408_v49 }
  0xd4   :  { %1846 = vmatpush1.bf16.msra.mxu0 %v3185_v60  ;;  %2961 = vmatprep.subr.bf16.mxu1 %v3605_v14  ;;  %v3378_v60 = vcombine.high %v463_v57, %v471_v58  ;;  %v288_v14 = vld [vmem:[#allocation2 + $0x218] sm:$0xff] }
  0xd5   :  { %1847 = vmatprep.subr.bf16.mxu0 %v3202_v61  ;;  %v224_v61 = vld [vmem:[#allocation2 + $0x18] sm:$0xff] }
  0xd6   :  { %v3140_v0 = vcombine.high %v224_v61, %v232_v62  ;;  %v440_v57 = vld [vmem:[#allocation2 + $0x6d8] sm:$0xff] }
  0xd7   :  { %2962 = vmatpush1.bf16.msra.mxu1 %v3603_v19  ;;  %v312_v19 = vld [vmem:[#allocation2 + $0x2d8] sm:$0xff] }
  0xd8   :  { %1848 = vmatpush1.bf16.msra.mxu0 %v3201_v2  ;;  %2963 = vmatprep.subr.bf16.mxu1 %v3608_v20  ;;  %v248_v2 = vld [vmem:[#allocation2 + $0xd8] sm:$0xff]  ;;  %v3219_v24 = vcombine.low %v304_v18, %v312_v19 }
  0xd9   :  { %1849 = vmatprep.subr.bf16.mxu0 %v3218_v3  ;;  %v3139_v3 = vcombine.low %v224_v61, %v232_v62  ;;  %v3156_v4 = vcombine.high %v240_v1, %v248_v2  ;;  %v3155_v7 = vcombine.low %v240_v1, %v248_v2  ;;  %v456_v61 = vld [vmem:[#allocation2 + $0x758] sm:$0xff] }
  0xda   :  { %v472_v1 = vld [vmem:[#allocation2 + $0x7d8] sm:$0xff] }
  0xdb   :  { %2964 = vmatpush1.bf16.msra.mxu1 %v3606_v25 }
  0xdc   :  { %1850 = vmatpush1.bf16.msra.mxu0 %v3217_v8  ;;  %2965 = vmatprep.subr.bf16.mxu1 %v3611_v26  ;;  %v3172_v8 = vcombine.high %v256_v5, %v264_v6  ;;  %v234_v5 = vld [vmem:[#allocation2 + $0x68] sm:$0xff] }
  0xdd   :  { %1851 = vmatprep.subr.bf16.mxu0 %v3234_v9  ;;  %v272_v9 = vld [vmem:[#allocation2 + $0x198] sm:$0xff] }
  0xde   :  { %v3188_v13 = vcombine.high %v272_v9, %v280_v10 }
  0xdf   :  { %2966 = vmatpush1.bf16.msra.mxu1 %v3609_v31 }
  0xe0   :  { %1852 = vmatpush1.bf16.msra.mxu0 %v3233_v15  ;;  %2967 = vmatprep.subr.bf16.mxu1 %v3614_v32  ;;  %v296_v15 = vld [vmem:[#allocation2 + $0x258] sm:$0xff] }
  0xe1   :  { %1853 = vmatprep.subr.bf16.mxu0 %v3250_v16  ;;  %v3187_v16 = vcombine.low %v272_v9, %v280_v10  ;;  %v3204_v17 = vcombine.high %v288_v14, %v296_v15  ;;  %v3203_v20 = vcombine.low %v288_v14, %v296_v15  ;;  %v250_v9 = vld [vmem:[#allocation2 + $0xe8] sm:$0xff] }
  0xe2   :  { %v266_v14 = vld [vmem:[#allocation2 + $0x168] sm:$0xff] }
  0xe3   :  { %2968 = vmatpush1.bf16.msra.mxu1 %v3612_v37 }
  0xe4   :  { %1854 = vmatpush1.bf16.msra.mxu0 %v3249_v21  ;;  %2969 = vmatprep.subr.bf16.mxu1 %v3617_v38  ;;  %v3220_v21 = vcombine.high %v304_v18, %v312_v19  ;;  %v3268_v38 = vcombine.high %v352_v35, %v360_v36  ;;  %v282_v18 = vld [vmem:[#allocation2 + $0x1e8] sm:$0xff] }
  0xe5   :  { %1855 = vmatprep.subr.bf16.mxu0 %v3266_v22  ;;  %v320_v22 = vld [vmem:[#allocation2 + $0x318] sm:$0xff] }
  0xe6   :  { %v3236_v25 = vcombine.high %v320_v22, %v328_v23  ;;  %v3235_v32 = vcombine.low %v320_v22, %v328_v23  ;;  %v290_v23 = vld [vmem:[#allocation2 + $0x228] sm:$0xff] }
  0xe7   :  { %2970 = vmatpush1.bf16.msra.mxu1 %v3615_v44  ;;  %v384_v44 = vld [vmem:[#allocation2 + $0x518] sm:$0xff] }
  0xe8   :  { %1856 = vmatpush1.bf16.msra.mxu0 %v3265_v27  ;;  %2971 = vmatprep.subr.bf16.mxu1 %v3620_v45  ;;  %v336_v27 = vld [vmem:[#allocation2 + $0x398] sm:$0xff] }
  0xe9   :  { %1857 = vmatprep.subr.bf16.mxu0 %v3282_v28  ;;  %v344_v28 = vld [vmem:[#allocation2 + $0x3d8] sm:$0xff] }
  0xea   :  { %v3251_v37 = vcombine.low %v336_v27, %v344_v28  ;;  %v392_v45 = vld [vmem:[#allocation2 + $0x558] sm:$0xff] }
  0xeb   :  { %2972 = vmatpush1.bf16.msra.mxu1 %v3618_v50  ;;  %v3299_v50 = vcombine.low %v384_v44, %v392_v45 }
  0xec   :  { %1858 = vmatpush1.bf16.msra.mxu0 %v3281_v33 }
  0xed   :  { %1859 = vmatprep.subr.bf16.mxu0 %v3298_v34  ;;  %v3252_v34 = vcombine.high %v336_v27, %v344_v28 }
  0xf0   :  { %1860 = vmatpush1.bf16.msra.mxu0 %v3297_v39  ;;  %v368_v39 = vld [vmem:[#allocation2 + $0x498] sm:$0xff] }
  0xf1   :  { %1861 = vmatprep.subr.bf16.mxu0 %v3314_v40  ;;  %v376_v40 = vld [vmem:[#allocation2 + $0x4d8] sm:$0xff] }
  0xf2   :  { %v3284_v43 = vcombine.high %v368_v39, %v376_v40 }
  0xf4   :  { %1862 = vmatpush1.bf16.msra.mxu0 %v3313_v46  ;;  %v3283_v46 = vcombine.low %v368_v39, %v376_v40  ;;  %v338_v40 = vld [vmem:[#allocation2 + $0x3a8] sm:$0xff] }
  0xf5   :  { %1863 = vmatprep.subr.bf16.mxu0 %v3330_v47  ;;  %v3300_v47 = vcombine.high %v384_v44, %v392_v45 }
  0xf8   :  { %1864 = vmatpush1.bf16.msra.mxu0 %v3329_v51  ;;  %v3316_v51 = vcombine.high %v400_v48, %v408_v49 }
  0xf9   :  { %1865 = vmatprep.subr.bf16.mxu0 %v3346_v52  ;;  %v416_v52 = vld [vmem:[#allocation2 + $0x618] sm:$0xff] }
  0xfa   :  { %v3331_v58 = vcombine.low %v416_v52, %v424_v53 }
  0xfc   :  { %1866 = vmatpush1.bf16.msra.mxu0 %v3345_v55  ;;  %v3332_v55 = vcombine.high %v416_v52, %v424_v53  ;;  %v354_v52 = vld [vmem:[#allocation2 + $0x428] sm:$0xff] }
  0xfd   :  { %1867 = vmatprep.subr.bf16.mxu0 %v3362_v56  ;;  %v432_v56 = vld [vmem:[#allocation2 + $0x698] sm:$0xff]  ;;  %v362_v53 = vld [vmem:[#allocation2 + $0x468] sm:$0xff] }
  0xfe   :  { %v3347_v62 = vcombine.low %v432_v56, %v440_v57 }
 0x100   :  { %1868 = vmatpush1.bf16.msra.mxu0 %v3361_v59  ;;  %v3348_v59 = vcombine.high %v432_v56, %v440_v57  ;;  %v370_v56 = vld [vmem:[#allocation2 + $0x4a8] sm:$0xff] }
 0x101   :  { %1869 = vmatprep.subr.bf16.mxu0 %v3378_v60  ;;  %v448_v60 = vld [vmem:[#allocation2 + $0x718] sm:$0xff]  ;;  %v378_v57 = vld [vmem:[#allocation2 + $0x4e8] sm:$0xff] }
 0x102   :  { %v3363_v2 = vcombine.low %v448_v60, %v456_v61 }
 0x104   :  { %1870 = vmatpush1.bf16.msra.mxu0 %v3377_v63  ;;  %v3364_v63 = vcombine.high %v448_v60, %v456_v61  ;;  %v386_v60 = vld [vmem:[#allocation2 + $0x528] sm:$0xff] }
 0x105   :  { %1880 = vmatprep.subr.bf16.mxu0 %v3140_v0  ;;  %v464_v0 = vld [vmem:[#allocation2 + $0x798] sm:$0xff]  ;;  %v394_v61 = vld [vmem:[#allocation2 + $0x568] sm:$0xff] }
 0x106   :  { %v3379_v6 = vcombine.low %v464_v0, %v472_v1 }
 0x107   :  { %1872 = vmatmul.mubr.bf16.vlgmr.msra.gmra.mrb[12].mxu0 %v3947_v42 }
 0x108   :  { %1881 = vmatpush1.bf16.msra.mxu0 %v3139_v3  ;;  %1912 = vmatprep.mubr.bf16.mxu0 %v3925_v12  ;;  %v3380_v3 = vcombine.high %v464_v0, %v472_v1  ;;  %v3304_v0 = vcombine.high %v386_v60, %v394_v61 }
 0x109   :  { %1882 = vmatprep.subr.bf16.mxu0 %v3156_v4  ;;  %v226_v4 = vld [vmem:[#allocation2 + $0x28] sm:$0xff] }
 0x10a   :  { %v3143_v10 = vcombine.low %v226_v4, %v234_v5 }
 0x10c   :  { %1883 = vmatpush1.bf16.msra.mxu0 %v3155_v7  ;;  %v3144_v7 = vcombine.high %v226_v4, %v234_v5  ;;  %v410_v4 = vld [vmem:[#allocation2 + $0x5e8] sm:$0xff]  ;;  %v3303_v5 = vcombine.low %v386_v60, %v394_v61  ;;  %v324_v61 = vld [vmem:[#allocation2 + $0x338] sm:$0xff] }
 0x10d   :  { %1884 = vmatprep.subr.bf16.mxu0 %v3172_v8  ;;  %v242_v8 = vld [vmem:[#allocation2 + $0xa8] sm:$0xff] }
 0x10e   :  { %v3159_v15 = vcombine.low %v242_v8, %v250_v9 }
 0x110   :  { %1885 = vmatpush1.bf16.msra.mxu0 %v3171_v11  ;;  %v3160_v11 = vcombine.high %v242_v8, %v250_v9 }
 0x111   :  { %1886 = vmatprep.subr.bf16.mxu0 %v3188_v13  ;;  %v258_v13 = vld [vmem:[#allocation2 + $0x128] sm:$0xff] }
 0x112   :  { %v3175_v19 = vcombine.low %v258_v13, %v266_v14 }
 0x114   :  { %1887 = vmatpush1.bf16.msra.mxu0 %v3187_v16  ;;  %v3176_v16 = vcombine.high %v258_v13, %v266_v14 }
 0x115   :  { %1888 = vmatprep.subr.bf16.mxu0 %v3204_v17  ;;  %v274_v17 = vld [vmem:[#allocation2 + $0x1a8] sm:$0xff] }
 0x116   :  { %v3191_v27 = vcombine.low %v274_v17, %v282_v18 }
 0x118   :  { %1889 = vmatpush1.bf16.msra.mxu0 %v3203_v20 }
 0x119   :  { %1890 = vmatprep.subr.bf16.mxu0 %v3220_v21  ;;  %v3192_v21 = vcombine.high %v274_v17, %v282_v18 }
 0x11a   :  { %v3533_v26 = vpop.f32.mrb[0].mxu0 }
 0x11b   :  { %v3534_v29 = vpop.f32.mrb[1].mxu0 }
 0x11c   :  { %v3535_v30 = vadd.f32 %v3534_v29, %v3533_v26  ;;  %v3536_v31 = vpop.f32.mrb[2].mxu0  ;;  %1891 = vmatpush1.bf16.msra.mxu0 %v3219_v24  ;;  %v298_v24 = vld [vmem:[#allocation2 + $0x268] sm:$0xff] }
 0x11d   :  { %v3537_v33 = vpop.f32.mrb[3].mxu0  ;;  %1892 = vmatprep.subr.bf16.mxu0 %v3236_v25  ;;  %v3208_v28 = vcombine.high %v290_v23, %v298_v24  ;;  %v306_v29 = vld [vmem:[#allocation2 + $0x2a8] sm:$0xff]  ;;  %v3207_v31 = vcombine.low %v290_v23, %v298_v24 }
 0x11e   :  { %220 = vst [vmem:[%s4018_s4] sm:$0xff] %v3535_v30  ;;  %v314_v30 = vld [vmem:[#allocation2 + $0x2e8] sm:$0xff] }
 0x11f   :  { %v322_v33 = vld [vmem:[#allocation2 + $0x328] sm:$0xff]  ;;  %v3223_v35 = vcombine.low %v306_v29, %v314_v30 }
 0x120   :  { %1893 = vmatpush1.bf16.msra.mxu0 %v3235_v32  ;;  %v3224_v32 = vcombine.high %v306_v29, %v314_v30  ;;  %v466_v29 = vld [vmem:[#allocation2 + $0x7a8] sm:$0xff] }
 0x121   :  { %1894 = vmatprep.subr.bf16.mxu0 %v3252_v34  ;;  %v330_v34 = vld [vmem:[#allocation2 + $0x368] sm:$0xff] }
 0x122   :  { %v474_v30 = vld [vmem:[#allocation2 + $0x7e8] sm:$0xff] }
 0x124   :  { %1895 = vmatpush1.bf16.msra.mxu0 %v3251_v37  ;;  %v3240_v37 = vcombine.high %v322_v33, %v330_v34 }
 0x125   :  { %1896 = vmatprep.subr.bf16.mxu0 %v3268_v38 }
 0x128   :  { %1897 = vmatpush1.bf16.msra.mxu0 %v3267_v41  ;;  %v346_v41 = vld [vmem:[#allocation2 + $0x3e8] sm:$0xff] }
 0x129   :  { %1898 = vmatprep.subr.bf16.mxu0 %v3284_v43 }
 0x12c   :  { %1899 = vmatpush1.bf16.msra.mxu0 %v3283_v46 }
 0x12d   :  { %1900 = vmatprep.subr.bf16.mxu0 %v3300_v47  ;;  %v3239_v47 = vcombine.low %v322_v33, %v330_v34  ;;  %v228_v33 = vld [vmem:[#allocation2 + $0x38] sm:$0xff] }
 0x12e   :  { %v236_v34 = vld [vmem:[#allocation2 + $0x78] sm:$0xff] }
 0x130   :  { %1901 = vmatpush1.bf16.msra.mxu0 %v3299_v50  ;;  %v3256_v50 = vcombine.high %v338_v40, %v346_v41 }
 0x131   :  { %1902 = vmatprep.subr.bf16.mxu0 %v3316_v51 }
 0x134   :  { %1903 = vmatpush1.bf16.msra.mxu0 %v3315_v54  ;;  %v3255_v54 = vcombine.low %v338_v40, %v346_v41  ;;  %v260_v41 = vld [vmem:[#allocation2 + $0x138] sm:$0xff] }
 0x135   :  { %1904 = vmatprep.subr.bf16.mxu0 %v3332_v55  ;;  %v3272_v55 = vcombine.high %v354_v52, %v362_v53 }
 0x138   :  { %1905 = vmatpush1.bf16.msra.mxu0 %v3331_v58  ;;  %v3271_v58 = vcombine.low %v354_v52, %v362_v53  ;;  %v292_v52 = vld [vmem:[#allocation2 + $0x238] sm:$0xff] }
 0x139   :  { %1906 = vmatprep.subr.bf16.mxu0 %v3348_v59  ;;  %v3288_v59 = vcombine.high %v370_v56, %v378_v57  ;;  %v300_v53 = vld [vmem:[#allocation2 + $0x278] sm:$0xff] }
 0x13c   :  { %1907 = vmatpush1.bf16.msra.mxu0 %v3347_v62  ;;  %v3287_v62 = vcombine.low %v370_v56, %v378_v57  ;;  %v308_v57 = vld [vmem:[#allocation2 + $0x2b8] sm:$0xff] }
 0x13d   :  { %1908 = vmatprep.subr.bf16.mxu0 %v3364_v63 }
 0x140   :  { %1909 = vmatpush1.bf16.msra.mxu0 %v3363_v2 }
 0x141   :  { %1910 = vmatprep.subr.bf16.mxu0 %v3380_v3  ;;  %v1955_v20 = vpop.f32.mrb[0].mxu1  ;;  %v402_v3 = vld [vmem:[#allocation2 + $0x5a8] sm:$0xff] }
 0x142   :  { %v1957_v22 = vpop.f32.mrb[1].mxu1  ;;  %v2093_v36 = vmul.f32 %v1955_v20, %v1955_v20  ;;  %v3320_v13 = vcombine.high %v402_v3, %v410_v4 }
 0x143   :  { %v1959_v25 = vpop.f32.mrb[2].mxu1  ;;  %v2094_v39 = vmul.f32 %v1957_v22, %v1957_v22  ;;  %v442_v22 = vld [vmem:[#allocation2 + $0x6e8] sm:$0xff] }
 0x144   :  { %1911 = vmatpush1.bf16.msra.mxu0 %v3379_v6  ;;  %v1960_v26 = vpop.f32.mrb[3].mxu1  ;;  %v450_v25 = vld [vmem:[#allocation2 + $0x728] sm:$0xff] }
 0x145   :  { %1962 = vmatprep.subr.bf16.mxu0 %v3144_v7  ;;  %v458_v26 = vld [vmem:[#allocation2 + $0x768] sm:$0xff] }
 0x147   :  { %1913 = vmatmul.mubr.bf16.vlgmr.msra.gmra.mrb[16].mxu0 %v3947_v42 }
 0x148   :  { %1963 = vmatpush1.bf16.msra.mxu0 %v3143_v10  ;;  %1994 = vmatprep.mubr.bf16.mxu0 %v3925_v12 }
 0x149   :  { %1964 = vmatprep.subr.bf16.mxu0 %v3160_v11 }
 0x14c   :  { %1965 = vmatpush1.bf16.msra.mxu0 %v3159_v15  ;;  %v418_v15 = vld [vmem:[#allocation2 + $0x628] sm:$0xff] }
 0x14d   :  { %1966 = vmatprep.subr.bf16.mxu0 %v3176_v16  ;;  %v426_v16 = vld [vmem:[#allocation2 + $0x668] sm:$0xff] }
 0x14e   :  { %v3336_v20 = vcombine.high %v418_v15, %v426_v16  ;;  %v3335_v23 = vcombine.low %v418_v15, %v426_v16  ;;  %v3624_v16 = vld [vmem:[#allocation4 + $0x110] ss:$8 sps:$4 sm:$0xff]  }
 0x150   :  { %1967 = vmatpush1.bf16.msra.mxu0 %v3175_v19  ;;  %v3319_v19 = vcombine.low %v402_v3, %v410_v4  ;;  %v348_v3 = vld [vmem:[#allocation2 + $0x3f8] sm:$0xff] }
 0x151   :  { %1968 = vmatprep.subr.bf16.mxu0 %v3192_v21  ;;  %v434_v21 = vld [vmem:[#allocation2 + $0x6a8] sm:$0xff] }
 0x152   :  { %v3352_v24 = vcombine.high %v434_v21, %v442_v22 }
 0x154   :  { %1969 = vmatpush1.bf16.msra.mxu0 %v3191_v27  ;;  %v3351_v27 = vcombine.low %v434_v21, %v442_v22  ;;  %v3627_v22 = vld [vmem:[#allocation4 + $0x120] ss:$8 sps:$4 sm:$0xff]  }
 0x155   :  { %1970 = vmatprep.subr.bf16.mxu0 %v3208_v28  ;;  %v3368_v28 = vcombine.high %v450_v25, %v458_v26 }
 0x158   :  { %1971 = vmatpush1.bf16.msra.mxu0 %v3207_v31  ;;  %v3367_v31 = vcombine.low %v450_v25, %v458_v26  ;;  %v388_v25 = vld [vmem:[#allocation2 + $0x538] sm:$0xff] }
 0x159   :  { %1972 = vmatprep.subr.bf16.mxu0 %v3224_v32  ;;  %v3384_v32 = vcombine.high %v466_v29, %v474_v30  ;;  %v396_v26 = vld [vmem:[#allocation2 + $0x578] sm:$0xff] }
 0x15a   :  { %v1791_v38 = vpop.f32.mrb[4].mxu0 }
 0x15b   :  { %v2085_v43 = vmul.f32 %v1791_v38, %v1791_v38  ;;  %v1793_v44 = vpop.f32.mrb[5].mxu0  ;;  %v252_v38 = vld [vmem:[#allocation2 + $0xf8] sm:$0xff] }
 0x15c   :  { %v2086_v45 = vmul.f32 %v1793_v44, %v1793_v44  ;;  %v1795_v46 = vpop.f32.mrb[6].mxu0  ;;  %1973 = vmatpush1.bf16.msra.mxu0 %v3223_v35  ;;  %v3383_v35 = vcombine.low %v466_v29, %v474_v30  ;;  %v3308_v29 = vcombine.high %v388_v25, %v396_v26  ;;  %v3635_v30 = vld [vmem:[#allocation4 + $0x144] ss:$8 sps:$4 sm:$0xff]  }
 0x15d   :  { %v2101_v48 = vadd.f32 %v2093_v36, %v2085_v43  ;;  %v1796_v49 = vpop.f32.mrb[7].mxu0  ;;  %1974 = vmatprep.subr.bf16.mxu0 %v3240_v37  ;;  %v3148_v36 = vcombine.high %v228_v33, %v236_v34  ;;  %v244_v37 = vld [vmem:[#allocation2 + $0xb8] sm:$0xff] }
 0x15e   :  { %v2102_v51 = vadd.f32 %v2094_v39, %v2086_v45  ;;  %v3147_v39 = vcombine.low %v228_v33, %v236_v34  ;;  %v3164_v40 = vcombine.high %v244_v37, %v252_v38  ;;  %v268_v43 = vld [vmem:[#allocation2 + $0x178] sm:$0xff]  ;;  %v3163_v44 = vcombine.low %v244_v37, %v252_v38  ;;  %v3633_v34 = vld [vmem:[#allocation4 + $0x140] ss:$8 sps:$4 sm:$0xff]  }
 0x15f   :  { %3765 = vrsqrt.f32 %v2101_v48  ;;  %vm2111_vm0 = vcmp.eq.f32.partialorder %v2101_v48, inf  ;;  %v2114_v7 = vand.u32 2147483648, %v2101_v48  ;;  %vm2113_vm2 = vcmp.eq.f32.partialorder %v2101_v48, 0.0  ;;  %v276_v46 = vld [vmem:[#allocation2 + $0x1b8] sm:$0xff] }
 0x160   :  { %3767 = vrsqrt.f32 %v2102_v51  ;;  %1975 = vmatpush1.bf16.msra.mxu0 %v3239_v47  ;;  %vm2118_vm1 = vcmp.eq.f32.partialorder %v2102_v51, inf  ;;  %v2121_v8 = vand.u32 2147483648, %v2102_v51  ;;  %vm2120_vm3 = vcmp.eq.f32.partialorder %v2102_v51, 0.0  ;;  %v284_v47 = vld [vmem:[#allocation2 + $0x1f8] sm:$0xff] }
 0x161   :  { %1976 = vmatprep.subr.bf16.mxu0 %v3256_v50  ;;  %v3180_v45 = vcombine.high %v260_v41, %v268_v43  ;;  %v3196_v50 = vcombine.high %v276_v46, %v284_v47  ;;  %v3195_v56 = vcombine.low %v276_v46, %v284_v47  ;;  %v3307_v33 = vcombine.low %v388_v25, %v396_v26  ;;  %v420_v37 = vld [vmem:[#allocation2 + $0x638] sm:$0xff]  ;;  %v3639_v47 = vld [vmem:[#allocation4 + $0x160] ss:$8 sps:$4 sm:$0xff]  }
 0x162   :  { %v428_v38 = vld [vmem:[#allocation2 + $0x678] sm:$0xff] }
 0x163   :  { %v3339_v46 = vcombine.low %v420_v37, %v428_v38 }
 0x164   :  { %1977 = vmatpush1.bf16.msra.mxu0 %v3255_v54 }
 0x165   :  { %1978 = vmatprep.subr.bf16.mxu0 %v3272_v55 }
 0x168   :  { %1979 = vmatpush1.bf16.msra.mxu0 %v3271_v58  ;;  %v316_v58 = vld [vmem:[#allocation2 + $0x2f8] sm:$0xff] }
 0x169   :  { %v3766_v63 = vpop.eup %3765  ;;  %1980 = vmatprep.subr.bf16.mxu0 %v3288_v59  ;;  %v3211_v59 = vcombine.low %v292_v52, %v300_v53  ;;  %v3228_v60 = vcombine.high %v308_v57, %v316_v58 }
 0x16a   :  { %v3768_v1 = vpop.eup %3767  ;;  %v2110_v2 = vmul.f32 %v3766_v63, %v2101_v48  ;;  %v3227_v63 = vcombine.low %v308_v57, %v316_v58  ;;  %v468_v57 = vld [vmem:[#allocation2 + $0x7b8] sm:$0xff] }
 0x16b   :  { %v2117_v6 = vmul.f32 %v3768_v1, %v2102_v51  ;;  %v476_v58 = vld [vmem:[#allocation2 + $0x7f8] sm:$0xff] }
 0x16c   :  { %1981 = vmatpush1.bf16.msra.mxu0 %v3287_v62  ;;  %v2112_v9 = vsel %vm2111_vm0, %v2101_v48, %v2110_v2  ;;  %v3179_v48 = vcombine.low %v260_v41, %v268_v43  ;;  %v332_v62 = vld [vmem:[#allocation2 + $0x378] sm:$0xff]  ;;  %v3340_v41 = vcombine.high %v420_v37, %v428_v38  ;;  %v3641_v43 = vld [vmem:[#allocation4 + $0x164] ss:$8 sps:$4 sm:$0xff]  }
 0x16d   :  { %1982 = vmatprep.subr.bf16.mxu0 %v3304_v0  ;;  %v2119_v10 = vsel %vm2118_vm1, %v2102_v51, %v2117_v6  ;;  %v2115_v11 = vsel %vm2113_vm2, %v2114_v7, %v2112_v9  ;;  %v3244_v0 = vcombine.high %v324_v61, %v332_v62  ;;  %v340_v2 = vld [vmem:[#allocation2 + $0x3b8] sm:$0xff]  ;;  %v3243_v6 = vcombine.low %v324_v61, %v332_v62  ;;  %v3621_v9 = vld [vmem:[#allocation4 + $0x100] ss:$8 sps:$4 sm:$0xff]  }
 0x16e   :  { %v2122_v14 = vsel %vm2120_vm3, %v2121_v8, %v2119_v10  ;;  %v2165_v18 = vpack.c.bf16 %v2115_v11, %v2115_v11  ;;  %v3260_v8 = vcombine.high %v340_v2, %v348_v3  ;;  %v3623_v10 = vld [vmem:[#allocation4 + $0x104] ss:$8 sps:$4 sm:$0xff]   ;;  %v356_v11 = vld [vmem:[#allocation2 + $0x438] sm:$0xff]  ;;  %v3259_v15 = vcombine.low %v340_v2, %v348_v3  ;;  %v3651_v3 = vld [vmem:[#allocation4 + $0x1a0] ss:$8 sps:$4 sm:$0xff]  }
 0x16f   :  { %v2166_v17 = vpack.c.bf16 %v2122_v14, %v2122_v14  ;;  %v3626_v14 = vld [vmem:[#allocation4 + $0x114] ss:$8 sps:$4 sm:$0xff]   ;;  %2982 = vmatprep.subr.bf16.mxu1 %v3623_v10  ;;  %v3388_v61 = vcombine.high %v468_v57, %v476_v58  ;;  %v3653_v2 = vld [vmem:[#allocation4 + $0x1a4] ss:$8 sps:$4 sm:$0xff]  }
 0x170   :  { %1983 = vmatpush1.bf16.msra.mxu0 %v3303_v5  ;;  %v3650_v62 = vld [vmem:[#allocation4 + $0x194] ss:$8 sps:$4 sm:$0xff]  }
 0x171   :  { %2973 = vmatprep.mubr.bf16.mxu1 %v2166_v17  ;;  %1984 = vmatprep.subr.bf16.mxu0 %v3320_v13  ;;  %v364_v13 = vld [vmem:[#allocation2 + $0x478] sm:$0xff] }
 0x172   :  { %2974 = vmatmul.mubr.bf16.vlgmr.msra.gmra.mrb[8].mxu1 %v2165_v18  ;;  %v3276_v17 = vcombine.high %v356_v11, %v364_v13  ;;  %v3629_v18 = vld [vmem:[#allocation4 + $0x124] ss:$8 sps:$4 sm:$0xff]   ;;  %v3275_v21 = vcombine.low %v356_v11, %v364_v13  ;;  %v3656_v10 = vld [vmem:[#allocation4 + $0x1b4] ss:$8 sps:$4 sm:$0xff]  }
 0x173   :  { %2983 = vmatpush1.bf16.msra.mxu1 %v3621_v9 }
 0x174   :  { %1985 = vmatpush1.bf16.msra.mxu0 %v3319_v19  ;;  %2984 = vmatprep.subr.bf16.mxu1 %v3626_v14  ;;  %v372_v19 = vld [vmem:[#allocation2 + $0x4b8] sm:$0xff] }
 0x175   :  { %1986 = vmatprep.subr.bf16.mxu0 %v3336_v20  ;;  %v380_v20 = vld [vmem:[#allocation2 + $0x4f8] sm:$0xff] }
 0x176   :  { %v3654_v14 = vld [vmem:[#allocation4 + $0x1b0] ss:$8 sps:$4 sm:$0xff]  }
 0x177   :  { %2985 = vmatpush1.bf16.msra.mxu1 %v3624_v16 }
 0x178   :  { %1987 = vmatpush1.bf16.msra.mxu0 %v3335_v23  ;;  %v3292_v23 = vcombine.high %v372_v19, %v380_v20  ;;  %2986 = vmatprep.subr.bf16.mxu1 %v3629_v18  ;;  %v3657_v18 = vld [vmem:[#allocation4 + $0x1c0] ss:$8 sps:$4 sm:$0xff]  }
 0x179   :  { %1988 = vmatprep.subr.bf16.mxu0 %v3352_v24  ;;  %v3632_v24 = vld [vmem:[#allocation4 + $0x134] ss:$8 sps:$4 sm:$0xff]  }
 0x17b   :  { %2987 = vmatpush1.bf16.msra.mxu1 %v3627_v22  ;;  %v3666_v22 = vld [vmem:[#allocation4 + $0x1f0] ss:$8 sps:$4 sm:$0xff]  }
 0x17c   :  { %1989 = vmatpush1.bf16.msra.mxu0 %v3351_v27  ;;  %v3291_v27 = vcombine.low %v372_v19, %v380_v20  ;;  %2988 = vmatprep.subr.bf16.mxu1 %v3632_v24  ;;  %v3662_v19 = vld [vmem:[#allocation4 + $0x1d4] ss:$8 sps:$4 sm:$0xff]   ;;  %v3663_v20 = vld [vmem:[#allocation4 + $0x1e0] ss:$8 sps:$4 sm:$0xff]  }
 0x17d   :  { %1990 = vmatprep.subr.bf16.mxu0 %v3368_v28  ;;  %v3630_v28 = vld [vmem:[#allocation4 + $0x130] ss:$8 sps:$4 sm:$0xff]  }
 0x17f   :  { %2989 = vmatpush1.bf16.msra.mxu1 %v3630_v28 }
 0x180   :  { %1991 = vmatpush1.bf16.msra.mxu0 %v3367_v31  ;;  %v404_v31 = vld [vmem:[#allocation2 + $0x5b8] sm:$0xff]  ;;  %2990 = vmatprep.subr.bf16.mxu1 %v3635_v30 }
 0x181   :  { %1992 = vmatprep.subr.bf16.mxu0 %v3384_v32  ;;  %v3967_v49 = vpop.f32.mrb[4].mxu1  ;;  %v412_v32 = vld [vmem:[#allocation2 + $0x5f8] sm:$0xff] }
 0x182   :  { %v3969_v51 = vpop.f32.mrb[5].mxu1 }
 0x183   :  { %v2041_v54 = vpop.f32.mrb[6].mxu1  ;;  %2991 = vmatpush1.bf16.msra.mxu1 %v3633_v34 }
 0x184   :  { %1993 = vmatpush1.bf16.msra.mxu0 %v3383_v35  ;;  %v2042_v55 = vpop.f32.mrb[7].mxu1  ;;  %v3324_v35 = vcombine.high %v404_v31, %v412_v32 }
 0x185   :  { %2044 = vmatprep.subr.bf16.mxu0 %v3148_v36  ;;  %v3638_v36 = vld [vmem:[#allocation4 + $0x154] ss:$8 sps:$4 sm:$0xff]   ;;  %v3642_v55 = vld [vmem:[#allocation4 + $0x170] ss:$8 sps:$4 sm:$0xff]  }
 0x186   :  { %2992 = vmatprep.subr.bf16.mxu1 %v3638_v36 }
 0x187   :  { %1995 = vmatmul.mubr.bf16.vlgmr.msra.gmra.mrb[20].mxu0 %v3947_v42 }
 0x188   :  { %2045 = vmatpush1.bf16.msra.mxu0 %v3147_v39  ;;  %2076 = vmatprep.mubr.bf16.mxu0 %v3925_v12  ;;  %v3212_v12 = vcombine.high %v292_v52, %v300_v53  ;;  %v3323_v39 = vcombine.low %v404_v31, %v412_v32  ;;  %v452_v52 = vld [vmem:[#allocation2 + $0x738] sm:$0xff] }
 0x189   :  { %2046 = vmatprep.subr.bf16.mxu0 %v3164_v40  ;;  %v3636_v40 = vld [vmem:[#allocation4 + $0x150] ss:$8 sps:$4 sm:$0xff]  }
 0x18a   :  { %2993 = vmatpush1.bf16.msra.mxu1 %v3636_v40  ;;  %v460_v53 = vld [vmem:[#allocation2 + $0x778] sm:$0xff] }
 0x18b   :  { %2994 = vmatprep.subr.bf16.mxu1 %v3641_v43 }
 0x18c   :  { %2047 = vmatpush1.bf16.msra.mxu0 %v3163_v44  ;;  %v436_v44 = vld [vmem:[#allocation2 + $0x6b8] sm:$0xff] }
 0x18d   :  { %2048 = vmatprep.subr.bf16.mxu0 %v3180_v45  ;;  %v444_v45 = vld [vmem:[#allocation2 + $0x6f8] sm:$0xff] }
 0x18e   :  { %v3355_v54 = vcombine.low %v436_v44, %v444_v45  ;;  %2995 = vmatpush1.bf16.msra.mxu1 %v3639_v47 }
 0x190   :  { %2049 = vmatpush1.bf16.msra.mxu0 %v3179_v48  ;;  %v3356_v48 = vcombine.high %v436_v44, %v444_v45 }
 0x191   :  { %2050 = vmatprep.subr.bf16.mxu0 %v3196_v50  ;;  %v3644_v50 = vld [vmem:[#allocation4 + $0x174] ss:$8 sps:$4 sm:$0xff]  }
 0x192   :  { %2996 = vmatprep.subr.bf16.mxu1 %v3644_v50 }
 0x193   :  { %2997 = vmatpush1.bf16.msra.mxu1 %v3642_v55  ;;  %v3669_v55 = vld [vmem:[#allocation4 + $0x200] ss:$8 sps:$4 sm:$0xff]  }
 0x194   :  { %2051 = vmatpush1.bf16.msra.mxu0 %v3195_v56  ;;  %v3372_v56 = vcombine.high %v452_v52, %v460_v53 }
 0x195   :  { %2052 = vmatprep.subr.bf16.mxu0 %v3212_v12  ;;  %v3647_v12 = vld [vmem:[#allocation4 + $0x184] ss:$8 sps:$4 sm:$0xff]  }
 0x196   :  { %2998 = vmatprep.subr.bf16.mxu1 %v3647_v12  ;;  %v3674_v12 = vld [vmem:[#allocation4 + $0x214] ss:$8 sps:$4 sm:$0xff]  }
 0x198   :  { %2053 = vmatpush1.bf16.msra.mxu0 %v3211_v59  ;;  %v3371_v59 = vcombine.low %v452_v52, %v460_v53 }
 0x199   :  { %2054 = vmatprep.subr.bf16.mxu0 %v3228_v60  ;;  %v3645_v60 = vld [vmem:[#allocation4 + $0x180] ss:$8 sps:$4 sm:$0xff]  }
 0x19a   :  { %v3971_v1 = vpop.f32.mrb[8].mxu0  ;;  %2999 = vmatpush1.bf16.msra.mxu1 %v3645_v60  ;;  %v3675_v60 = vld [vmem:[#allocation4 + $0x220] ss:$8 sps:$4 sm:$0xff]  }
 0x19b   :  { %v3973_v4 = vpop.f32.mrb[9].mxu0  ;;  %3000 = vmatprep.subr.bf16.mxu1 %v3650_v62  ;;  %v3678_v62 = vld [vmem:[#allocation4 + $0x230] ss:$8 sps:$4 sm:$0xff]  }
 0x19c   :  { %v1836_v5 = vpop.f32.mrb[10].mxu0  ;;  %2055 = vmatpush1.bf16.msra.mxu0 %v3227_v63  ;;  %v3387_v63 = vcombine.low %v468_v57, %v476_v58  ;;  %v2088_v32 = vmul.f32 %v3973_v4, %v3973_v4  ;;  %v3672_v58 = vld [vmem:[#allocation4 + $0x210] ss:$8 sps:$4 sm:$0xff]  }
 0x19d   :  { %v1837_v7 = vpop.f32.mrb[11].mxu0  ;;  %2056 = vmatprep.subr.bf16.mxu0 %v3244_v0  ;;  %v3648_v0 = vld [vmem:[#allocation4 + $0x190] ss:$8 sps:$4 sm:$0xff]   ;;  %v2097_v5 = vmul.f32 %v3967_v49, %v3967_v49 }
 0x19e   :  { %3001 = vmatpush1.bf16.msra.mxu1 %v3648_v0  ;;  %v2098_v7 = vmul.f32 %v3969_v51, %v3969_v51  ;;  %v3660_v49 = vld [vmem:[#allocation4 + $0x1d0] ss:$8 sps:$4 sm:$0xff]   ;;  %v3665_v51 = vld [vmem:[#allocation4 + $0x1e4] ss:$8 sps:$4 sm:$0xff]   ;;  %v3681_v0 = vld [vmem:[#allocation4 + $0x240] ss:$8 sps:$4 sm:$0xff]  }
 0x19f   :  { %3002 = vmatprep.subr.bf16.mxu1 %v3653_v2  ;;  %v3686_v2 = vld [vmem:[#allocation4 + $0x254] ss:$8 sps:$4 sm:$0xff]  }
 0x1a0   :  { %2057 = vmatpush1.bf16.msra.mxu0 %v3243_v6 }
 0x1a1   :  { %2058 = vmatprep.subr.bf16.mxu0 %v3260_v8 }
 0x1a2   :  { %3003 = vmatpush1.bf16.msra.mxu1 %v3651_v3  ;;  %v3684_v3 = vld [vmem:[#allocation4 + $0x250] ss:$8 sps:$4 sm:$0xff]  }
 0x1a3   :  { %3004 = vmatprep.subr.bf16.mxu1 %v3656_v10  ;;  %v3693_v10 = vld [vmem:[#allocation4 + $0x280] ss:$8 sps:$4 sm:$0xff]  }
 0x1a4   :  { %2059 = vmatpush1.bf16.msra.mxu0 %v3259_v15 }
 0x1a5   :  { %2060 = vmatprep.subr.bf16.mxu0 %v3276_v17 }
 0x1a6   :  { %3005 = vmatpush1.bf16.msra.mxu1 %v3654_v14  ;;  %v3701_v14 = vld [vmem:[#allocation4 + $0x2a4] ss:$8 sps:$4 sm:$0xff]  }
 0x1a8   :  { %2061 = vmatpush1.bf16.msra.mxu0 %v3275_v21  ;;  %v3668_v21 = vld [vmem:[#allocation4 + $0x1f4] ss:$8 sps:$4 sm:$0xff]  }
 0x1a9   :  { %2062 = vmatprep.subr.bf16.mxu0 %v3292_v23  ;;  %v3671_v23 = vld [vmem:[#allocation4 + $0x204] ss:$8 sps:$4 sm:$0xff]  }
 0x1ac   :  { %2063 = vmatpush1.bf16.msra.mxu0 %v3291_v27 }
 0x1ad   :  { %2064 = vmatprep.subr.bf16.mxu0 %v3308_v29  ;;  %v2087_v29 = vmul.f32 %v3971_v1, %v3971_v1 }
 0x1b0   :  { %2065 = vmatpush1.bf16.msra.mxu0 %v3307_v33 }
 0x1b1   :  { %2066 = vmatprep.subr.bf16.mxu0 %v3324_v35 }
 0x1b4   :  { %2067 = vmatpush1.bf16.msra.mxu0 %v3323_v39 }
 0x1b5   :  { %2068 = vmatprep.subr.bf16.mxu0 %v3340_v41 }
 0x1b8   :  { %2069 = vmatpush1.bf16.msra.mxu0 %v3339_v46 }
 0x1b9   :  { %2070 = vmatprep.subr.bf16.mxu0 %v3356_v48 }
 0x1bc   :  { %2071 = vmatpush1.bf16.msra.mxu0 %v3355_v54 }
 0x1bd   :  { %2072 = vmatprep.subr.bf16.mxu0 %v3372_v56 }
 0x1c0   :  { %2073 = vmatpush1.bf16.msra.mxu0 %v3371_v59  ;;  %v3677_v59 = vld [vmem:[#allocation4 + $0x224] ss:$8 sps:$4 sm:$0xff]  }
 0x1c1   :  { %2074 = vmatprep.subr.bf16.mxu0 %v3388_v61  ;;  %v3680_v61 = vld [vmem:[#allocation4 + $0x234] ss:$8 sps:$4 sm:$0xff]  }
 0x1c4   :  { %2075 = vmatpush1.bf16.msra.mxu0 %v3387_v63  ;;  %v3683_v63 = vld [vmem:[#allocation4 + $0x244] ss:$8 sps:$4 sm:$0xff]  }
 0x1c7   :  { %2077 = vmatmul.mubr.bf16.vlgmr.msra.gmra.mrb[24].mxu0 %v3947_v42  ;;  %v3659_v42 = vld [vmem:[#allocation4 + $0x1c4] ss:$8 sps:$4 sm:$0xff]  }
 0x1c8   :  { %3006 = vmatprep.subr.bf16.mxu1 %v3659_v42 }
 0x1c9   :  { %3007 = vmatpush1.bf16.msra.mxu1 %v3657_v18 }
 0x1ca   :  { %3008 = vmatprep.subr.bf16.mxu1 %v3662_v19 }
 0x1cd   :  { %3009 = vmatpush1.bf16.msra.mxu1 %v3660_v49 }
 0x1ce   :  { %3010 = vmatprep.subr.bf16.mxu1 %v3665_v51  ;;  %v3702_v51 = vld [vmem:[#allocation4 + $0x2b0] ss:$8 sps:$4 sm:$0xff]  }
 0x1d1   :  { %3011 = vmatpush1.bf16.msra.mxu1 %v3663_v20 }
 0x1d2   :  { %3012 = vmatprep.subr.bf16.mxu1 %v3668_v21 }
 0x1d5   :  { %3013 = vmatpush1.bf16.msra.mxu1 %v3666_v22  ;;  %v3707_v22 = vld [vmem:[#allocation4 + $0x2c4] ss:$8 sps:$4 sm:$0xff]  }
 0x1d6   :  { %3023 = vmatprep.subr.bf16.mxu1 %v3671_v23 }
 0x1da   :  { %v1873_v6 = vpop.f32.mrb[12].mxu0 }
 0x1db   :  { %v2089_v8 = vmul.f32 %v1873_v6, %v1873_v6  ;;  %v1875_v9 = vpop.f32.mrb[13].mxu0  ;;  %v3687_v6 = vld [vmem:[#allocation4 + $0x260] ss:$8 sps:$4 sm:$0xff]  }
 0x1dc   :  { %v2090_v11 = vmul.f32 %v1875_v9, %v1875_v9  ;;  %v1877_v13 = vpop.f32.mrb[14].mxu0  ;;  %v3695_v9 = vld [vmem:[#allocation4 + $0x284] ss:$8 sps:$4 sm:$0xff]  }
 0x1dd   :  { %v3980_v15 = vadd.f32 %v2097_v5, %v2089_v8  ;;  %v1878_v16 = vpop.f32.mrb[15].mxu0  ;;  %v3689_v5 = vld [vmem:[#allocation4 + $0x264] ss:$8 sps:$4 sm:$0xff]   ;;  %v3690_v8 = vld [vmem:[#allocation4 + $0x270] ss:$8 sps:$4 sm:$0xff]  }
 0x1de   :  { %v2106_v17 = vadd.f32 %v2098_v7, %v2090_v11  ;;  %v3692_v7 = vld [vmem:[#allocation4 + $0x274] ss:$8 sps:$4 sm:$0xff]   ;;  %v3696_v13 = vld [vmem:[#allocation4 + $0x290] ss:$8 sps:$4 sm:$0xff]   ;;  %v3699_v16 = vld [vmem:[#allocation4 + $0x2a0] ss:$8 sps:$4 sm:$0xff]  }
 0x1df   :  { %v3698_v11 = vld [vmem:[#allocation4 + $0x294] ss:$8 sps:$4 sm:$0xff]   ;;  %vm2139_vm10 = vcmp.eq.f32.partialorder %v3980_v15, inf  ;;  %vm2141_vm11 = vcmp.eq.f32.partialorder %v3980_v15, 0.0 }
 0x1e0   :  { %3769 = vrsqrt.f32 %v2106_v17  ;;  %vm2146_vm4 = vcmp.eq.f32.partialorder %v2106_v17, inf  ;;  %v2149_v44 = vand.u32 2147483648, %v2106_v17  ;;  %vm2148_vm9 = vcmp.eq.f32.partialorder %v2106_v17, 0.0 }
 0x1ea   :  { %v3770_v38 = vpop.eup %3769 }
 0x1eb   :  { %v2145_v39 = vmul.f32 %v3770_v38, %v2106_v17  ;;  %v2142_v38 = vand.u32 2147483648, %v3980_v15 }
 0x1ed   :  { %v2147_v46 = vsel %vm2146_vm4, %v2106_v17, %v2145_v39  ;;  %v3704_v17 = vld [vmem:[#allocation4 + $0x2b4] ss:$8 sps:$4 sm:$0xff]  }
 0x1ee   :  { %v2150_v53 = vsel %vm2148_vm9, %v2149_v44, %v2147_v46 }
 0x1ef   :  { %v2170_v57 = vpack.c.bf16 %v2150_v53, %v2150_v53  ;;  %v3726_v53 = vld [vmem:[#allocation4 + $0x330] ss:$8 sps:$4 sm:$0xff]  }
 0x21a   :  { %v3982_v24 = vpop.f32.mrb[16].mxu0 }
 0x21b   :  { %v3984_v25 = vpop.f32.mrb[17].mxu0  ;;  %v2091_v18 = vmul.f32 %v3982_v24, %v3982_v24  ;;  %v3710_v24 = vld [vmem:[#allocation4 + $0x2d4] ss:$8 sps:$4 sm:$0xff]  }
 0x21c   :  { %v1918_v26 = vpop.f32.mrb[18].mxu0  ;;  %v2092_v20 = vmul.f32 %v3984_v25, %v3984_v25 }
 0x21d   :  { %v1919_v27 = vpop.f32.mrb[19].mxu0 }
 0x25a   :  { %v1996_v28 = vpop.f32.mrb[20].mxu0 }
 0x25b   :  { %v2095_v30 = vmul.f32 %v1996_v28, %v1996_v28  ;;  %v1998_v31 = vpop.f32.mrb[21].mxu0 }
 0x25c   :  { %v2096_v33 = vmul.f32 %v1998_v31, %v1998_v31  ;;  %v2000_v34 = vpop.f32.mrb[22].mxu0  ;;  %v3708_v31 = vld [vmem:[#allocation4 + $0x2d0] ss:$8 sps:$4 sm:$0xff]  }
 0x25d   :  { %v2103_v35 = vadd.f32 %v2095_v30, %v2087_v29  ;;  %v2001_v36 = vpop.f32.mrb[23].mxu0  ;;  %v3705_v29 = vld [vmem:[#allocation4 + $0x2c0] ss:$8 sps:$4 sm:$0xff]   ;;  %v3716_v34 = vld [vmem:[#allocation4 + $0x2f4] ss:$8 sps:$4 sm:$0xff]  }
 0x25e   :  { %v2104_v37 = vadd.f32 %v2096_v33, %v2088_v32  ;;  %v3713_v32 = vld [vmem:[#allocation4 + $0x2e4] ss:$8 sps:$4 sm:$0xff]   ;;  %v3711_v33 = vld [vmem:[#allocation4 + $0x2e0] ss:$8 sps:$4 sm:$0xff]  }
 0x25f   :  { %3771 = vrsqrt.f32 %v2103_v35  ;;  %vm2125_vm5 = vcmp.eq.f32.partialorder %v2103_v35, inf  ;;  %v2128_v45 = vand.u32 2147483648, %v2103_v35  ;;  %vm2127_vm7 = vcmp.eq.f32.partialorder %v2103_v35, 0.0 }
 0x260   :  { %3773 = vrsqrt.f32 %v2104_v37  ;;  %vm2132_vm6 = vcmp.eq.f32.partialorder %v2104_v37, inf  ;;  %v2135_v4 = vand.u32 2147483648, %v2104_v37  ;;  %vm2134_vm8 = vcmp.eq.f32.partialorder %v2104_v37, 0.0 }
 0x261   :  { %3775 = vrsqrt.f32 %v3980_v15 }
 0x269   :  { %v3772_v40 = vpop.eup %3771 }
 0x26a   :  { %v3774_v41 = vpop.eup %3773  ;;  %v2124_v43 = vmul.f32 %v3772_v40, %v2103_v35  ;;  %v3719_v40 = vld [vmem:[#allocation4 + $0x304] ss:$8 sps:$4 sm:$0xff]  }
 0x26b   :  { %v2131_v1 = vmul.f32 %v3774_v41, %v2104_v37  ;;  %v3776_v30 = vpop.eup %3775 }
 0x26c   :  { %v2126_v47 = vsel %vm2125_vm5, %v2103_v35, %v2124_v43  ;;  %v2138_v25 = vmul.f32 %v3776_v30, %v3980_v15 }
 0x26d   :  { %v2133_v48 = vsel %vm2132_vm6, %v2104_v37, %v2131_v1  ;;  %v2129_v50 = vsel %vm2127_vm7, %v2128_v45, %v2126_v47  ;;  %v3714_v37 = vld [vmem:[#allocation4 + $0x2f0] ss:$8 sps:$4 sm:$0xff]   ;;  %v3717_v45 = vld [vmem:[#allocation4 + $0x300] ss:$8 sps:$4 sm:$0xff]   ;;  %v3722_v47 = vld [vmem:[#allocation4 + $0x314] ss:$8 sps:$4 sm:$0xff]  }
 0x26e   :  { %v2136_v52 = vsel %vm2134_vm8, %v2135_v4, %v2133_v48  ;;  %v2167_v56 = vpack.c.bf16 %v2129_v50, %v2129_v50  ;;  %v2140_v36 = vsel %vm2139_vm10, %v3980_v15, %v2138_v25  ;;  %v3720_v48 = vld [vmem:[#allocation4 + $0x310] ss:$8 sps:$4 sm:$0xff]   ;;  %v3725_v50 = vld [vmem:[#allocation4 + $0x324] ss:$8 sps:$4 sm:$0xff]   ;;  %v3723_v15 = vld [vmem:[#allocation4 + $0x320] ss:$8 sps:$4 sm:$0xff]  }
 0x26f   :  { %v2168_v54 = vpack.c.bf16 %v2136_v52, %v2136_v52  ;;  %v2143_v43 = vsel %vm2141_vm11, %v2142_v38, %v2140_v36  ;;  %v3728_v52 = vld [vmem:[#allocation4 + $0x334] ss:$8 sps:$4 sm:$0xff]  }
 0x270   :  { %v2169_v4 = vpack.c.bf16 %v2143_v43, %v2143_v43 }
 0x271   :  { %3014 = vmatprep.mubr.bf16.mxu1 %v2168_v54  ;;  %v3731_v54 = vld [vmem:[#allocation4 + $0x344] ss:$8 sps:$4 sm:$0xff]  }
 0x272   :  { %3015 = vmatmul.mubr.bf16.vlgmr.msra.gmra.mrb[8].mxu1 %v2167_v56  ;;  %v3734_v56 = vld [vmem:[#allocation4 + $0x354] ss:$8 sps:$4 sm:$0xff]  }
 0x273   :  { %3024 = vmatpush1.bf16.msra.mxu1 %v3669_v55  ;;  %3055 = vmatprep.mubr.bf16.mxu1 %v2170_v57  ;;  %v3729_v55 = vld [vmem:[#allocation4 + $0x340] ss:$8 sps:$4 sm:$0xff]   ;;  %v3737_v57 = vld [vmem:[#allocation4 + $0x364] ss:$8 sps:$4 sm:$0xff]  }
 0x274   :  { %3025 = vmatprep.subr.bf16.mxu1 %v3674_v12  ;;  %v3732_v12 = vld [vmem:[#allocation4 + $0x350] ss:$8 sps:$4 sm:$0xff]  }
 0x277   :  { %3026 = vmatpush1.bf16.msra.mxu1 %v3672_v58  ;;  %v3735_v58 = vld [vmem:[#allocation4 + $0x360] ss:$8 sps:$4 sm:$0xff]  }
 0x278   :  { %3027 = vmatprep.subr.bf16.mxu1 %v3677_v59  ;;  %v3740_v59 = vld [vmem:[#allocation4 + $0x374] ss:$8 sps:$4 sm:$0xff]  }
 0x27b   :  { %3028 = vmatpush1.bf16.msra.mxu1 %v3675_v60  ;;  %v3738_v60 = vld [vmem:[#allocation4 + $0x370] ss:$8 sps:$4 sm:$0xff]  }
 0x27c   :  { %3029 = vmatprep.subr.bf16.mxu1 %v3680_v61  ;;  %v3743_v61 = vld [vmem:[#allocation4 + $0x384] ss:$8 sps:$4 sm:$0xff]  }
 0x27f   :  { %3030 = vmatpush1.bf16.msra.mxu1 %v3678_v62  ;;  %v3741_v62 = vld [vmem:[#allocation4 + $0x380] ss:$8 sps:$4 sm:$0xff]  }
 0x280   :  { %3031 = vmatprep.subr.bf16.mxu1 %v3683_v63  ;;  %v3746_v63 = vld [vmem:[#allocation4 + $0x394] ss:$8 sps:$4 sm:$0xff]  }
 0x283   :  { %3032 = vmatpush1.bf16.msra.mxu1 %v3681_v0  ;;  %v3744_v0 = vld [vmem:[#allocation4 + $0x390] ss:$8 sps:$4 sm:$0xff]  }
 0x284   :  { %3033 = vmatprep.subr.bf16.mxu1 %v3686_v2  ;;  %v3749_v2 = vld [vmem:[#allocation4 + $0x3a4] ss:$8 sps:$4 sm:$0xff]  }
 0x287   :  { %3034 = vmatpush1.bf16.msra.mxu1 %v3684_v3  ;;  %v3747_v3 = vld [vmem:[#allocation4 + $0x3a0] ss:$8 sps:$4 sm:$0xff]  }
 0x288   :  { %3035 = vmatprep.subr.bf16.mxu1 %v3689_v5  ;;  %v3752_v5 = vld [vmem:[#allocation4 + $0x3b4] ss:$8 sps:$4 sm:$0xff]  }
 0x28b   :  { %3036 = vmatpush1.bf16.msra.mxu1 %v3687_v6  ;;  %v3750_v6 = vld [vmem:[#allocation4 + $0x3b0] ss:$8 sps:$4 sm:$0xff]  }
 0x28c   :  { %3037 = vmatprep.subr.bf16.mxu1 %v3692_v7  ;;  %v3755_v7 = vld [vmem:[#allocation4 + $0x3c4] ss:$8 sps:$4 sm:$0xff]  }
 0x28f   :  { %3038 = vmatpush1.bf16.msra.mxu1 %v3690_v8  ;;  %v3753_v8 = vld [vmem:[#allocation4 + $0x3c0] ss:$8 sps:$4 sm:$0xff]  }
 0x290   :  { %3039 = vmatprep.subr.bf16.mxu1 %v3695_v9  ;;  %v3758_v9 = vld [vmem:[#allocation4 + $0x3d4] ss:$8 sps:$4 sm:$0xff]  }
 0x293   :  { %3040 = vmatpush1.bf16.msra.mxu1 %v3693_v10 }
 0x294   :  { %3041 = vmatprep.subr.bf16.mxu1 %v3698_v11  ;;  %v3756_v11 = vld [vmem:[#allocation4 + $0x3d0] ss:$8 sps:$4 sm:$0xff]  }
 0x297   :  { %3042 = vmatpush1.bf16.msra.mxu1 %v3696_v13  ;;  %v3761_v13 = vld [vmem:[#allocation4 + $0x3e4] ss:$8 sps:$4 sm:$0xff]  }
 0x298   :  { %3043 = vmatprep.subr.bf16.mxu1 %v3701_v14 }
 0x29a   :  { %v2078_v42 = vpop.f32.mrb[24].mxu0 }
 0x29b   :  { %v2099_v19 = vmul.f32 %v2078_v42, %v2078_v42  ;;  %3044 = vmatpush1.bf16.msra.mxu1 %v3699_v16  ;;  %v2080_v49 = vpop.f32.mrb[25].mxu0  ;;  %v3759_v16 = vld [vmem:[#allocation4 + $0x3e0] ss:$8 sps:$4 sm:$0xff]  }
 0x29c   :  { %v2100_v21 = vmul.f32 %v2080_v49, %v2080_v49  ;;  %3045 = vmatprep.subr.bf16.mxu1 %v3704_v17  ;;  %v2082_v23 = vpop.f32.mrb[26].mxu0  ;;  %v3764_v17 = vld [vmem:[#allocation4 + $0x3f4] ss:$8 sps:$4 sm:$0xff]  }
 0x29d   :  { %v3995_v26 = vadd.f32 %v2099_v19, %v2091_v18  ;;  %v2083_v27 = vpop.f32.mrb[27].mxu0  ;;  %v3762_v18 = vld [vmem:[#allocation4 + $0x3f0] ss:$8 sps:$4 sm:$0xff]  }
 0x29e   :  { %v2108_v28 = vadd.f32 %v2100_v21, %v2092_v20 }
 0x29f   :  { %3046 = vmatpush1.bf16.msra.mxu1 %v3702_v51  ;;  %vm2153_vm14 = vcmp.eq.f32.partialorder %v3995_v26, inf  ;;  %v2156_v19 = vand.u32 2147483648, %v3995_v26  ;;  %vm2155_vm15 = vcmp.eq.f32.partialorder %v3995_v26, 0.0 }
 0x2a0   :  { %3777 = vrsqrt.f32 %v2108_v28  ;;  %3047 = vmatprep.subr.bf16.mxu1 %v3707_v22  ;;  %vm2160_vm12 = vcmp.eq.f32.partialorder %v2108_v28, inf  ;;  %v2163_v41 = vand.u32 2147483648, %v2108_v28  ;;  %vm2162_vm13 = vcmp.eq.f32.partialorder %v2108_v28, 0.0 }
 0x2a1   :  { %3779 = vrsqrt.f32 %v3995_v26 }
 0x2a3   :  { %3048 = vmatpush1.bf16.msra.mxu1 %v3705_v29 }
 0x2a4   :  { %3049 = vmatprep.subr.bf16.mxu1 %v3710_v24 }
 0x2a7   :  { %3050 = vmatpush1.bf16.msra.mxu1 %v3708_v31 }
 0x2a8   :  { %3051 = vmatprep.subr.bf16.mxu1 %v3713_v32 }
 0x2aa   :  { %v3778_v35 = vpop.eup %3777 }
 0x2ab   :  { %3052 = vmatpush1.bf16.msra.mxu1 %v3711_v33  ;;  %v2159_v39 = vmul.f32 %v3778_v35, %v2108_v28  ;;  %v3780_v10 = vpop.eup %3779 }
 0x2ac   :  { %3053 = vmatprep.subr.bf16.mxu1 %v3716_v34  ;;  %v2152_v14 = vmul.f32 %v3780_v10, %v3995_v26 }
 0x2ad   :  { %v2161_v44 = vsel %vm2160_vm12, %v2108_v28, %v2159_v39 }
 0x2ae   :  { %v2164_v1 = vsel %vm2162_vm13, %v2163_v41, %v2161_v44  ;;  %v2154_v42 = vsel %vm2153_vm14, %v3995_v26, %v2152_v14 }
 0x2af   :  { %3054 = vmatpush1.bf16.msra.mxu1 %v3714_v37  ;;  %v2172_v46 = vpack.c.bf16 %v2164_v1, %v2164_v1  ;;  %v2157_v49 = vsel %vm2155_vm15, %v2156_v19, %v2154_v42 }
 0x2b0   :  { %3064 = vmatprep.subr.bf16.mxu1 %v3719_v40  ;;  %v2171_v51 = vpack.c.bf16 %v2157_v49, %v2157_v49 }
 0x2b2   :  { %3056 = vmatmul.mubr.bf16.vlgmr.msra.gmra.mrb[8].mxu1 %v2169_v4 }
 0x2b3   :  { %3065 = vmatpush1.bf16.msra.mxu1 %v3717_v45  ;;  %3096 = vmatprep.mubr.bf16.mxu1 %v2172_v46 }
 0x2b4   :  { %3066 = vmatprep.subr.bf16.mxu1 %v3722_v47 }
 0x2b7   :  { %3067 = vmatpush1.bf16.msra.mxu1 %v3720_v48 }
 0x2b8   :  { %3068 = vmatprep.subr.bf16.mxu1 %v3725_v50 }
 0x2bb   :  { %3069 = vmatpush1.bf16.msra.mxu1 %v3723_v15 }
 0x2bc   :  { %3070 = vmatprep.subr.bf16.mxu1 %v3728_v52 }
 0x2bf   :  { %3071 = vmatpush1.bf16.msra.mxu1 %v3726_v53 }
 0x2c0   :  { %3072 = vmatprep.subr.bf16.mxu1 %v3731_v54 }
 0x2c3   :  { %3073 = vmatpush1.bf16.msra.mxu1 %v3729_v55 }
 0x2c4   :  { %3074 = vmatprep.subr.bf16.mxu1 %v3734_v56 }
 0x2c7   :  { %3075 = vmatpush1.bf16.msra.mxu1 %v3732_v12 }
 0x2c8   :  { %3076 = vmatprep.subr.bf16.mxu1 %v3737_v57 }
 0x2cb   :  { %3077 = vmatpush1.bf16.msra.mxu1 %v3735_v58 }
 0x2cc   :  { %3078 = vmatprep.subr.bf16.mxu1 %v3740_v59 }
 0x2cf   :  { %3079 = vmatpush1.bf16.msra.mxu1 %v3738_v60 }
 0x2d0   :  { %3080 = vmatprep.subr.bf16.mxu1 %v3743_v61 }
 0x2d3   :  { %3081 = vmatpush1.bf16.msra.mxu1 %v3741_v62 }
 0x2d4   :  { %3082 = vmatprep.subr.bf16.mxu1 %v3746_v63 }
 0x2d7   :  { %3083 = vmatpush1.bf16.msra.mxu1 %v3744_v0 }
 0x2d8   :  { %3084 = vmatprep.subr.bf16.mxu1 %v3749_v2 }
 0x2db   :  { %3085 = vmatpush1.bf16.msra.mxu1 %v3747_v3 }
 0x2dc   :  { %3086 = vmatprep.subr.bf16.mxu1 %v3752_v5 }
 0x2df   :  { %3087 = vmatpush1.bf16.msra.mxu1 %v3750_v6 }
 0x2e0   :  { %3088 = vmatprep.subr.bf16.mxu1 %v3755_v7 }
 0x2e3   :  { %3089 = vmatpush1.bf16.msra.mxu1 %v3753_v8 }
 0x2e4   :  { %3090 = vmatprep.subr.bf16.mxu1 %v3758_v9 }
 0x2e7   :  { %3091 = vmatpush1.bf16.msra.mxu1 %v3756_v11 }
 0x2e8   :  { %3092 = vmatprep.subr.bf16.mxu1 %v3761_v13 }
 0x2eb   :  { %3093 = vmatpush1.bf16.msra.mxu1 %v3759_v16 }
 0x2ec   :  { %3094 = vmatprep.subr.bf16.mxu1 %v3764_v17 }
 0x2ef   :  { %3095 = vmatpush1.bf16.msra.mxu1 %v3762_v18 }
 0x2f2   :  { %3097 = vmatmul.mubr.bf16.vlgmr.msra.gmra.mrb[8].mxu1 %v2171_v51 }
 0x3c5   :  { %v3098_v20 = vpop.f32.mrb[8].mxu1 }
 0x3c6   :  { %3105 = vst [vmem:[%s4019_s5] sm:$0xff] %v3098_v20  ;;  %v3100_v21 = vpop.f32.mrb[9].mxu1 }
 0x3c7   :  { %3106 = vst [vmem:[%s4019_s5 + $0x8] sm:$0xff] %v3100_v21  ;;  %v3102_v22 = vpop.f32.mrb[10].mxu1 }
 0x3c8   :  { %v3103_v23 = vpop.f32.mrb[11].mxu1 }
 0x3c9   :  { %3115 = vsyncpa [#allocation3], 1 }
 0x3ca   :  { %3116 = vsyncpa [#allocation5], 1 }

</bundles_post_ra>
